<compile_context>
chip_gen: v7x
topology: tpu7x:2x2x1
jax: 0.10.0
libtpu: 0.0.40
codegen_flags: <defaults>
</compile_context>

<pallas_src>
import functools
import math

import jax
import jax.numpy as jnp
import numpy as np
from jax.experimental import pallas as pl
from jax.experimental.pallas import tpu as pltpu


def _sine_embed_kernel(y_ref, x_ref, inv_ref, ph_ref, out_ref, *, npf, tc):
    """One grid step = (batch b, channel tile c, spatial tile s).

    y_ref, x_ref : (1, 1, TS)  f32  normalized y_embed / x_embed (flattened H*W)
    inv_ref      : (TC, 1)     f32  1 / dim_t for this channel tile
    ph_ref       : (TC, 1)     f32  0 or pi/2 phase (cos(t) == sin(t + pi/2))
    out_ref      : (1, TC, TS) f32  positional encoding, channels-first
    """
    y = y_ref[0]          # (1, TS)
    x = x_ref[0]          # (1, TS)
    inv = inv_ref[...]    # (TC, 1)
    ph = ph_ref[...]      # (TC, 1)

    if tc < 2 * npf:
        # TC divides npf, so this channel tile lies entirely in the pos_y half or the
        # pos_x half; a single scalar-predicate select over (1, TS) picks the source
        # embedding -- negligible vs. the (TC, TS) sin work.
        use_y = pl.program_id(1) * tc < npf
        e = jnp.where(use_y, y, x)                        # (1, TS)
        out_ref[0] = jnp.sin(e * inv + ph)                # (TC, TS)
    else:
        # Fallback (npf not a multiple of 8): one channel block spans both halves.
        out_ref[0, :npf] = jnp.sin(y * inv[:npf] + ph[:npf])
        out_ref[0, npf:] = jnp.sin(x * inv[npf:] + ph[npf:])


def _default_block_budget_bytes():
    """Generation-aware budget for a single (un-double-buffered) output block."""
    try:
        info = pltpu.get_tpu_info()
        vmem = int(getattr(info, "vmem_capacity_bytes", 128 * 1024 * 1024))
    except Exception:  # not a real TPU / interpret mode: be conservative
        vmem = 128 * 1024 * 1024
    # v7x: 64 MiB VMEM per TensorCore -> smaller blocks; v5e/v6e (128 MiB) -> larger.
    return 2 * 1024 * 1024 if vmem <= 64 * 1024 * 1024 else 4 * 1024 * 1024


def position_embedding_sine_hw(mask, *, num_pos_feats=64, temperatureH=10000,
                               temperatureW=10000, normalize=False, scale=None,
                               block_budget_bytes=None):
    """mask: (B, H, W) bool (True = padded). Returns (B, 2*num_pos_feats, H, W) f32."""
    if scale is not None and normalize is False:
        raise ValueError("normalize should be True if scale is passed")
    if scale is None:
        scale = 2 * math.pi

    npf = int(num_pos_feats)
    if npf % 2 != 0:
        # The PyTorch stack/flatten channel layout itself requires an even count.
        raise ValueError("num_pos_feats must be even")
    C = 2 * npf
    B, H, W = mask.shape
    N = H * W

    # ---- XLA-side prep (tiny: (B, H, W) is 1/C of the output bytes) ----
    not_mask = jnp.logical_not(mask).astype(jnp.float32)
    y_embed = jnp.cumsum(not_mask, axis=1)
    x_embed = jnp.cumsum(not_mask, axis=2)
    if normalize:
        eps = 1e-6
        y_embed = y_embed / (y_embed[:, -1:, :] + eps) * scale
        x_embed = x_embed / (x_embed[:, :, -1:] + eps) * scale
    y_flat = y_embed.reshape(B, 1, N)
    x_flat = x_embed.reshape(B, 1, N)

    # ---- per-channel constants, passed as kernel INPUTS (not captured) ----
    #   inv_all[k] = temperature ** (-2*floor(k/2)/npf),  phase_all[k] = (k % 2) * pi/2
    k = np.arange(npf, dtype=np.float64)
    expo = 2.0 * np.floor(k / 2.0) / float(npf)
    inv_y = float(temperatureH) ** (-expo)
    inv_x = float(temperatureW) ** (-expo)
    half_phase = (k % 2) * (np.pi / 2.0)
    inv_all = jnp.asarray(
        np.concatenate([inv_y, inv_x]).astype(np.float32).reshape(C, 1))
    ph_all = jnp.asarray(
        np.concatenate([half_phase, half_phase]).astype(np.float32).reshape(C, 1))

    # ---- tiling ----
    if block_budget_bytes is None:
        block_budget_bytes = _default_block_budget_bytes()
    # Channel tile: keep each tile entirely inside the y or x half when possible.
    tc = npf if npf % 8 == 0 else C
    # Spatial tile: lane-dense multiple of 128 (or the whole flattened axis).
    ts_cap = max(128, (int(block_budget_bytes) // (tc * 4)) // 128 * 128)
    ts = N if N <= ts_cap else ts_cap
    n_c = C // tc
    n_s = pl.cdiv(N, ts)

    out_block_bytes = tc * ts * 4
    vmem_limit = int(min(100 * 1024 * 1024, 3 * out_block_bytes + 4 * 1024 * 1024))

    kernel = functools.partial(_sine_embed_kernel, npf=npf, tc=tc)

    pos_flat = pl.pallas_call(
        kernel,
        out_shape=jax.ShapeDtypeStruct((B, C, N), jnp.float32),
        grid=(B, n_c, n_s),
        in_specs=[
            pl.BlockSpec((1, 1, ts), lambda b, c, s: (b, 0, s)),   # y_embed tile
            pl.BlockSpec((1, 1, ts), lambda b, c, s: (b, 0, s)),   # x_embed tile
            pl.BlockSpec((tc, 1), lambda b, c, s: (c, 0)),         # 1 / dim_t
            pl.BlockSpec((tc, 1), lambda b, c, s: (c, 0)),         # phase
        ],
        out_specs=pl.BlockSpec((1, tc, ts), lambda b, c, s: (b, c, s)),
        compiler_params=pltpu.CompilerParams(
            dimension_semantics=("parallel", "parallel", "parallel"),
            vmem_limit_bytes=vmem_limit,
        ),
    )(y_flat, x_flat, inv_all, ph_all)

    # Free (contiguous) metadata reshape back to NCHW.
    return pos_flat.reshape(B, C, H, W)


def _reference(mask, num_pos_feats, temperatureH, temperatureW, normalize, scale):
    """Pure-numpy reference mirroring the PyTorch forward."""
    mask = np.asarray(mask)
    not_mask = (~mask).astype(np.float32)
    y_embed = np.cumsum(not_mask, axis=1, dtype=np.float32)
    x_embed = np.cumsum(not_mask, axis=2, dtype=np.float32)
    if normalize:
        eps = 1e-6
        y_embed = y_embed / (y_embed[:, -1:, :] + eps) * scale
        x_embed = x_embed / (x_embed[:, :, -1:] + eps) * scale
    dim_tx = np.arange(num_pos_feats, dtype=np.float32)
    dim_tx = temperatureW ** (2 * (dim_tx // 2) / num_pos_feats)
    pos_x = x_embed[:, :, :, None] / dim_tx
    dim_ty = np.arange(num_pos_feats, dtype=np.float32)
    dim_ty = temperatureH ** (2 * (dim_ty // 2) / num_pos_feats)
    pos_y = y_embed[:, :, :, None] / dim_ty
    pos_x = np.stack((np.sin(pos_x[:, :, :, 0::2]),
                      np.cos(pos_x[:, :, :, 1::2])), axis=4).reshape(*pos_x.shape[:3], -1)
    pos_y = np.stack((np.sin(pos_y[:, :, :, 0::2]),
                      np.cos(pos_y[:, :, :, 1::2])), axis=4).reshape(*pos_y.shape[:3], -1)
    pos = np.concatenate((pos_y, pos_x), axis=3).transpose(0, 3, 1, 2)
    return pos


def _make_mask(key, B, H, W):
    kh, kw = jax.random.split(key)
    valid_h = jax.random.randint(kh, (B,), H // 2, H + 1)
    valid_w = jax.random.randint(kw, (B,), W // 2, W + 1)
    rows = jnp.arange(H)[None, :, None]
    cols = jnp.arange(W)[None, None, :]
    return (rows >= valid_h[:, None, None]) | (cols >= valid_w[:, None, None])


if __name__ == "__main__":
    num_pos_feats = 64
    scale = 2 * math.pi
    key = jax.random.PRNGKey(0)

    # Case 1: small map (W < 128) -> single lane-dense spatial block of 256.
    # Case 2: N = 2240 with a tiny forced budget -> multiple spatial tiles plus a
    #         ragged (masked) last block.
    # Case 3: normalize=False path, N = 2048 single block.
    cases = [
        dict(B=2, H=16, W=16, normalize=True, budget=None),
        dict(B=2, H=40, W=56, normalize=True, budget=64 * 1024),
        dict(B=2, H=32, W=64, normalize=False, budget=None),
    ]

    for cfg in cases:
        key, sub = jax.random.split(key)
        mask = _make_mask(sub, cfg["B"], cfg["H"], cfg["W"])
        pos = position_embedding_sine_hw(
            mask,
            num_pos_feats=num_pos_feats,
            temperatureH=10000,
            temperatureW=10000,
            normalize=cfg["normalize"],
            scale=scale if cfg["normalize"] else None,
            block_budget_bytes=cfg["budget"],
        )
        pos = jax.block_until_ready(pos)

        ref = _reference(np.asarray(mask), num_pos_feats, 10000, 10000,
                         cfg["normalize"], scale)
        assert pos.shape == (cfg["B"], 2 * num_pos_feats, cfg["H"], cfg["W"]), pos.shape
        np.testing.assert_allclose(np.asarray(pos), ref, rtol=1e-5, atol=5e-5)

    print("KERNEL_OK")
</pallas_src>

<mosaic_0001>
module attributes {stable_mosaic.version = 11 : i64} {
  func.func @_sine_embed_kernel(%arg0: i32, %arg1: i32, %arg2: i32, %arg3: memref<1x1x256xf32, #tpu.memory_space<vmem>>, %arg4: memref<1x1x256xf32, #tpu.memory_space<vmem>>, %arg5: memref<64x1xf32, #tpu.memory_space<vmem>>, %arg6: memref<64x1xf32, #tpu.memory_space<vmem>>, %arg7: memref<1x64x256xf32, #tpu.memory_space<vmem>>) attributes {dimension_semantics = [#tpu.dimension_semantics<parallel>, #tpu.dimension_semantics<parallel>, #tpu.dimension_semantics<parallel>], iteration_bounds = array<i64: 2, 2, 1>, scalar_prefetch = 0 : i64, scratch_operands = 0 : i64, tpu.core_type = #tpu.core_type<tc>, window_params = [{transform_indices = @transform_0, window_bounds = array<i64: 1, 1, 256>}, {transform_indices = @transform_1, window_bounds = array<i64: 1, 1, 256>}, {transform_indices = @transform_2, window_bounds = array<i64: 64, 1>}, {transform_indices = @transform_3, window_bounds = array<i64: 64, 1>}, {transform_indices = @transform_4, window_bounds = array<i64: 1, 64, 256>}]} {
    %c0 = arith.constant 0 : index
    %c0_0 = arith.constant 0 : index
    %c0_1 = arith.constant 0 : index
    %0 = vector.load %arg3[%c0, %c0_0, %c0_1] : memref<1x1x256xf32, #tpu.memory_space<vmem>>, vector<1x1x256xf32>
    %1 = vector.shape_cast %0 : vector<1x1x256xf32> to vector<1x256xf32>
    %c0_2 = arith.constant 0 : index
    %c0_3 = arith.constant 0 : index
    %c0_4 = arith.constant 0 : index
    %2 = vector.load %arg4[%c0_2, %c0_3, %c0_4] : memref<1x1x256xf32, #tpu.memory_space<vmem>>, vector<1x1x256xf32>
    %3 = vector.shape_cast %2 : vector<1x1x256xf32> to vector<1x256xf32>
    %c0_5 = arith.constant 0 : index
    %c0_6 = arith.constant 0 : index
    %4 = vector.load %arg5[%c0_5, %c0_6] : memref<64x1xf32, #tpu.memory_space<vmem>>, vector<64x1xf32>
    %c0_7 = arith.constant 0 : index
    %c0_8 = arith.constant 0 : index
    %5 = vector.load %arg6[%c0_7, %c0_8] : memref<64x1xf32, #tpu.memory_space<vmem>>, vector<64x1xf32>
    %c64_i32 = arith.constant 64 : i32
    %6 = arith.muli %arg1, %c64_i32 : i32
    %c64_i32_9 = arith.constant 64 : i32
    %7 = arith.cmpi slt, %6, %c64_i32_9 : i32
    %8 = arith.select %7, %1, %3 : vector<1x256xf32>
    %9 = vector.broadcast %8 : vector<1x256xf32> to vector<64x256xf32>
    %10 = vector.broadcast %4 : vector<64x1xf32> to vector<64x256xf32>
    %11 = arith.mulf %9, %10 : vector<64x256xf32>
    %12 = vector.broadcast %5 : vector<64x1xf32> to vector<64x256xf32>
    %13 = arith.addf %11, %12 : vector<64x256xf32>
    %14 = math.sin %13 : vector<64x256xf32>
    %c0_10 = arith.constant 0 : index
    %c0_11 = arith.constant 0 : index
    %c0_12 = arith.constant 0 : index
    %15 = vector.load %arg7[%c0_10, %c0_11, %c0_12] : memref<1x64x256xf32, #tpu.memory_space<vmem>>, vector<1x64x256xf32>
    %16 = vector.shape_cast %15 : vector<1x64x256xf32> to vector<64x256xf32>
    %17 = vector.shape_cast %14 : vector<64x256xf32> to vector<1x64x256xf32>
    tpu.vector_store %arg7[%c0_10, %c0_11, %c0_12], %17 {strides = array<i32>} : memref<1x64x256xf32, #tpu.memory_space<vmem>>, vector<1x64x256xf32>,
    return
  }
  func.func @transform_0(%arg0: i32, %arg1: i32, %arg2: i32) -> (i32, i32, i32) {
    %c0_i32 = arith.constant 0 : i32
    %c0_i32_0 = arith.constant 0 : i32
    return %arg0, %c0_i32, %arg2 : i32, i32, i32
  }
  func.func @transform_1(%arg0: i32, %arg1: i32, %arg2: i32) -> (i32, i32, i32) {
    %c0_i32 = arith.constant 0 : i32
    %c0_i32_0 = arith.constant 0 : i32
    return %arg0, %c0_i32, %arg2 : i32, i32, i32
  }
  func.func @transform_2(%arg0: i32, %arg1: i32, %arg2: i32) -> (i32, i32) {
    %c0_i32 = arith.constant 0 : i32
    %c0_i32_0 = arith.constant 0 : i32
    return %arg1, %c0_i32 : i32, i32
  }
  func.func @transform_3(%arg0: i32, %arg1: i32, %arg2: i32) -> (i32, i32) {
    %c0_i32 = arith.constant 0 : i32
    %c0_i32_0 = arith.constant 0 : i32
    return %arg1, %c0_i32 : i32, i32
  }
  func.func @transform_4(%arg0: i32, %arg1: i32, %arg2: i32) -> (i32, i32, i32) {
    %c0_i32 = arith.constant 0 : i32
    return %arg0, %arg1, %arg2 : i32, i32, i32
  }
}

</mosaic_0001>

<bundles_post_ra>
// kernel: tpu_custom_call.1
= control target key start
LH: loop header
LB: loop body
LE: loop exit
PB: predicated region body
PF: predicated region fallthrough
CT: control target
= control target key end

     0   :  { %9 = vsyncpa [#allocation3], 0  ;;  %s4102_s0 = inlined_call_operand.vmem [shape: f32[2,1,256], index: 0, kind: input, shape index: {}]   ;;  %s4103_s1 = inlined_call_operand.vmem [shape: f32[2,1,256], index: 1, kind: input, shape index: {}]   ;;  %s4104_s2 = inlined_call_operand.vmem [shape: f32[128,1], index: 2, kind: input, shape index: {}]   ;;  %s4105_s3 = inlined_call_operand.vmem [shape: f32[128,1], index: 3, kind: input, shape index: {}]   ;;  %s4106_s4 = inlined_call_operand.hbm [shape: f32[2,128,256], index: 4, kind: output, shape index: {}]  }
   0x1   :  { %11 = vsyncpa [#allocation3 + $0x1], 0  ;;  %s2706_s15 = smov 0   ;;  %s2708_s16 = smov 0  }
   0x2   :  { %s2710_s17 = smov 0   ;;  %s2712_s18 = smov 0  }
   0x3   :  { %s2714_s19 = smov 0   ;;  %s2716_s20 = smov 0  }
   0x4   :  { %s2718_s21 = smov 0   ;;  %s2720_s22 = smov 0  }
   0x5 LB: > { %s2280_s23 = sadd.s32 4294967295, %s2669_s22   ;;  %s2281_s24 = sadd.s32 4294967294, %s2669_s22   ;;  %s2669_s22 = sphi %s2720_s22, %s17_s22   ;;  %s2665_s21 = sphi %s2718_s21, %s4143_s21   ;;  %s2661_s20 = sphi %s2716_s20, %s4142_s20   ;;  %s2657_s19 = sphi %s2714_s19, %s4141_s19   ;;  %s2653_s18 = sphi %s2712_s18, %s4140_s18   ;;  %s2649_s17 = sphi %s2710_s17, %s4139_s17   ;;  %s2645_s16 = sphi %s2708_s16, %s4138_s16   ;;  %s2641_s15 = sphi %s2706_s15, %s4137_s15  }
   0x6   : > { %s32_s25 = sadd.s32 1, %s2661_s20  ;;  %s36_s26 = sadd.s32 1, %s2665_s21 }
   0x7   : > { %p34_p0 = scmp.ge.s32.totalorder %s32_s25, 2  ;;  %p165_p1 = scmp.ne.s32.totalorder %s2649_s17, %s2645_s16 }
   0x8   : > { %p166_p2 = scmp.eq.s32.totalorder %s2280_s23, 3  ;;  %p171_p5 = scmp.ne.s32.totalorder %s2645_s16, %s2641_s15 }
   0x9   : > { %s4145_s25 = smov (%p34_p0, %s32_s25), 0  ;;  %s4147_s26 = smov (!%p34_p0, %s36_s26), %s2665_s21 }
   0xa   : > { %s149_s27 = ssub.s32 %s2661_s20, %s4145_s25  ;;  %p2757_p3 = por %p166_p2, %p165_p1 }
   0xb   : > { %p38_p4 = scmp.ge.s32.totalorder %s4147_s26, 2  ;;  %p172_p6 = scmp.eq.s32.totalorder %s2281_s24, 3 }
   0xc   : > { %p2284_p7 = scmp.ge.s32.totalorder %s2669_s22, 1  ;;  %p232_p9 = scmp.lt.s32.totalorder %s2669_s22, 5 }
   0xd   : > { %s4149_s26 = smov (%p38_p4, %s4147_s26), 0  ;;  %p2766_p8 = por %p172_p6, %p171_p5 }
   0xe   : > { %s148_s30 = ssub.s32 %s2665_s21, %s4149_s26  ;;  %s155_s5 = sadd.s32 1, %s2649_s17 }
   0xf   : > { %s150_s6 = sor.u32 %s149_s27, %s148_s30  ;;  %p233_p10 = pnand %p2284_p7, %p232_p9 }
  0x10   : > { %p153_p11 = scmp.eq.s32.totalorder %s150_s6, 0  ;;  %s2288_s8 = sshll.u32 (!%p233_p10), %s2653_s18, 3  ;;  %v2671_v0 = vmov (!%p233_p10), 0   ;;  %v336_v17 = vlaneseq (!%p233_p10) }
  0x11   : > { %236 = sbr.rel (%p233_p10) target bundleno = 620 (0x26c), region = 36  ;;  %2510 = vset.pattern.permute.xlu1 (!%p233_p10), %v2671_v0  ;;  %2509 = vset.pattern.permute.xlu0 (!%p233_p10), %v2671_v0  ;;  %p298_p12 = scmp.lt.s32.totalorder (!%p233_p10), %s2288_s8, 15 }
  0x12   : > { %s2775_s7 = scalar_select %p153_p11, %s2649_s17, %s155_s5  }
  0x13   : > { %s2292_s24 = sshll.u32 (!%p233_p10), %s2653_s18, 6  ;;  %p280_p13 = scmp.lt.s32.totalorder (!%p233_p10), %s2657_s19, 1  ;;  %v337_v19 = vshrl.u32 (!%p233_p10), %v336_v17, 7 }
  0x14   : > { %p330_p0 = scmp.lt.s32.totalorder (!%p233_p10), %s2292_s24, 64  ;;  %s276_s13 = sand.u32 (!%p233_p10), 1, %s2645_s16  }
  0x15   : > { %v338_v22 = vsub.s32 (!%p233_p10), 0, %v337_v19  ;;  %v342_v23 = vsub.s32 (!%p233_p10), 1, %v337_v19  ;;  %s2285_s14 = sshll.u32 (!%p233_p10), %s276_s13, 7  ;;  %s2364_s24 = sshll.u32 (!%p233_p10), %s2653_s18, 4 }
  0x16   : > { %s2678_s11 = smov (!%p233_p10), [#allocation2]  }
  0x18   : > { %s4151_s8 = smov (!%p298_p12, %s2288_s8), 15 }
  0x19   : > { %s2289_s9 = sshll.u32 %s4151_s8, 3 }
  0x1a   : > { %s301_s12 = scalar_lea.vmem %s4104_s2, %s2289_s9  ;;  %s307_s23 = scalar_lea.vmem %s4105_s3, %s2289_s9 }
  0x1b   : > { %v315_v1 = vld [vmem:[%s301_s12 + $0x10] sm:$0xff]  ;;  %v313_v2 = vld [vmem:[%s301_s12] sm:$0xff]  ;;  %v316_v3 = vld [vmem:[%s301_s12 + $0x18] sm:$0xff]  ;;  %s281_s27 = scalar_select %p280_p13, %s2657_s19, 1 }
  0x1c   : > { %358 = vperm.xlu1 %2510, %v315_v1   ;;  %348 = vperm.xlu0 %2509, %v313_v2   ;;  %v314_v4 = vld [vmem:[%s301_s12 + $0x8] sm:$0xff]  ;;  %v317_v6 = vld [vmem:[%s301_s12 + $0x20] sm:$0xff]  ;;  %v320_v7 = vld [vmem:[%s301_s12 + $0x38] sm:$0xff]  ;;  %s331_s30 = scalar_select %p330_p0, 1, 0 }
  0x1d   : > { %v318_v5 = vld [vmem:[%s301_s12 + $0x28] sm:$0xff]  ;;  %v319_v8 = vld [vmem:[%s301_s12 + $0x30] sm:$0xff]  ;;  %v321_v10 = vld [vmem:[%s307_s23] sm:$0xff]  ;;  %s2286_s5 = sshll.u32 %s281_s27, 1  ;;  %s2360_s27 = sshll.u32 %s2657_s19, 5 }
  0x1e   : > { %v322_v9 = vld [vmem:[%s307_s23 + $0x8] sm:$0xff]  ;;  %v324_v11 = vld [vmem:[%s307_s23 + $0x18] sm:$0xff]  ;;  %v323_v12 = vld [vmem:[%s307_s23 + $0x10] sm:$0xff]  ;;  %v332_v18 = vstv %s331_s30  ;;  %s286_s9 = scalar_lea.vmem %s4102_s0, %s2286_s5  ;;  %s295_s12 = scalar_lea.vmem %s4103_s1, %s2286_s5 }
  0x1f   : > { %v326_v13 = vld [vmem:[%s307_s23 + $0x28] sm:$0xff]  ;;  %v325_v14 = vld [vmem:[%s307_s23 + $0x20] sm:$0xff]  ;;  %v328_v15 = vld [vmem:[%s307_s23 + $0x38] sm:$0xff]  ;;  %vm333_vm0 = vcmp.eq.s32.totalorder %v332_v18, 1  ;;  %s2154_s30 = sadd.s32 %s2364_s24, %s2360_s27  ;;  %s4050_s19 = scalar_lea.sflag [#allocation3], %s276_s13 }
  0x20   : > { %363 = vperm.xlu1 %2510, %v316_v3   ;;  %353 = vperm.xlu0 %2509, %v314_v4   ;;  %v327_v16 = vld [vmem:[%s307_s23 + $0x30] sm:$0xff]  ;;  %v311_v20 = vld [vmem:[%s286_s9] sm:$0x3]  ;;  %s3125_s23 = scalar_lea.vmem [#allocation2], %s2285_s14  ;;  %s2361_s5 = sshll.u32 %s2154_s30, 7 }
  0x21   : > { %v312_v21 = vld [vmem:[%s295_s12] sm:$0x3]  ;;  %s2157_s6 = sshll.u32 %s3125_s23, 4  ;;  %s4042_s18 = scalar_lea.hbm %s4106_s4, %s2361_s5  ;;  %s4044_s6 = int_to_ptr.vmem [resolvable:$true] %s2157_s6 }
  0x22   : > { %v334_v24 = vsel %vm333_vm0, %v311_v20, %v312_v21  ;;  %v2672_v21 = vmov 683565275   ;;  %s2575_s10 = scalar_lea.vmem %s4044_s6, 2048  ;;  %s2579_s12 = sshll.u32 %s2678_s11, 4  ;;  %s2580_s12 = int_to_ptr.vmem [resolvable:$false] %s2579_s12 }
  0x23   : > { %v339_v25 = vrot.slane %v334_v24, %v338_v22  ;;  %v343_v26 = vrot.slane %v334_v24, %v342_v23  ;;  %p2576_p1 = scmp.ne.s32.totalorder %s4044_s6, %s2575_s10  ;;  %s2581_s14 = scalar_lea.vmem %s2580_s12, 4096 }
  0x24   : > { %373 = vperm.xlu1 %2510, %v318_v5   ;;  %368 = vperm.xlu0 %2509, %v317_v6   ;;  %p2582_p5 = scmp.lt.s32.totalorder %s4044_s6, %s2580_s12  ;;  %p2583_p6 = scmp.lt.s32.totalorder %s2581_s14, %s2575_s10 }
  0x25   : > { %p2577_p2 = pnand %p2576_p1, %p2757_p3 }
  0x26   : > { %p2584_p7 = por %p2583_p6, %p2582_p5 }
  0x27   : > { %p2578_p4 = pneg %p2577_p2 }
  0x28   : > { %383 = vperm.xlu1 %2510, %v320_v7   ;;  %378 = vperm.xlu0 %2509, %v319_v8  }
  0x29   : > { %p2585_p9 = pnand %p2584_p7, %p2578_p4 }
  0x2c   : > { %409 = vperm.xlu1 %2510, %v322_v9   ;;  %404 = vperm.xlu0 %2509, %v321_v10  }
  0x30   : > { %419 = vperm.xlu1 %2510, %v324_v11   ;;  %414 = vperm.xlu0 %2509, %v323_v12  }
  0x34   : > { %429 = vperm.xlu1 %2510, %v326_v13   ;;  %424 = vperm.xlu0 %2509, %v325_v14  }
  0x38   : > { %439 = vperm.xlu1 %2510, %v328_v15   ;;  %434 = vperm.xlu0 %2509, %v327_v16  }
  0x9b   : > { %v359_v27 = vpop.permute.xlu1 %358  ;;  %v349_v28 = vpop.permute.xlu0 %348 }
  0x9c   : > { %v2793_v29 = vmul.f32 %v359_v27, %v339_v25  ;;  %v2795_v30 = vmul.f32 %v359_v27, %v343_v26  ;;  %v386_v49 = vmul.f32 %v349_v28, %v339_v25  ;;  %v387_v0 = vmul.f32 %v349_v28, %v343_v26 }
  0x9d   : > { %v2674_v27 = vmov 2131351028  }
  0x9f   : > { %v364_v31 = vpop.permute.xlu1 %363  ;;  %v354_v32 = vpop.permute.xlu0 %353 }
  0xa0   : > { %v2797_v33 = vmul.f32 %v364_v31, %v339_v25  ;;  %v2799_v34 = vmul.f32 %v364_v31, %v343_v26  ;;  %v388_v47 = vmul.f32 %v354_v32, %v339_v25  ;;  %v389_v48 = vmul.f32 %v354_v32, %v343_v26 }
  0xa1   : > { %v2675_v31 = vmov 2102212464  }
  0xa3   : > { %v374_v35 = vpop.permute.xlu1 %373  ;;  %v369_v36 = vpop.permute.xlu0 %368 }
  0xa4   : > { %v2801_v37 = vmul.f32 %v374_v35, %v339_v25  ;;  %v2803_v38 = vmul.f32 %v374_v35, %v343_v26  ;;  %v2805_v39 = vmul.f32 %v369_v36, %v339_v25  ;;  %v2807_v40 = vmul.f32 %v369_v36, %v343_v26 }
  0xa5   : > { %v2676_v35 = vmov 920167782  }
  0xa7   : > { %v384_v41 = vpop.permute.xlu1 %383  ;;  %v379_v42 = vpop.permute.xlu0 %378 }
  0xa8   : > { %v2809_v43 = vmul.f32 %v384_v41, %v339_v25  ;;  %v2811_v44 = vmul.f32 %v384_v41, %v343_v26  ;;  %v2813_v45 = vmul.f32 %v379_v42, %v339_v25  ;;  %v2815_v46 = vmul.f32 %v379_v42, %v343_v26 }
  0xa9   : > { %v2673_v25 = vmov 2475754826  }
  0xab   : > { %v410_v50 = vpop.permute.xlu1 %409  ;;  %v405_v51 = vpop.permute.xlu0 %404 }
  0xac   : > { %v2817_v52 = vadd.f32 %v410_v50, %v388_v47  ;;  %v2819_v53 = vadd.f32 %v410_v50, %v389_v48  ;;  %v2821_v54 = vadd.f32 %v405_v51, %v386_v49  ;;  %v2832_v6 = vadd.f32 %v405_v51, %v387_v0 }
  0xad   : > { %v2677_v50 = vmov 1326507024  }
  0xae   : > { %v666_v55 = vand.u32 2147483647, %v2817_v52  ;;  %v669_v56 = vand.u32 2139095040, %v2817_v52  ;;  %v770_v57 = vand.u32 2147483647, %v2819_v53  ;;  %v773_v58 = vand.u32 2139095040, %v2819_v53 }
  0xaf   : > { %v461_v63 = vand.u32 2139095040, %v2821_v54  ;;  %v458_v9 = vand.u32 2147483647, %v2821_v54  ;;  %v565_v19 = vand.u32 2139095040, %v2832_v6  ;;  %vm668_vm14 = vcmp.lt.s32.totalorder %v2817_v52, 0 }
  0xb0   : > { %v670_v59 = vshrl.u32 %v669_v56, 23  ;;  %v673_v60 = vand.u32 8388607, %v666_v55  ;;  %v774_v61 = vshrl.u32 %v773_v58, 23  ;;  %v777_v62 = vand.u32 8388607, %v770_v57 }
  0xb1   : > { %v462_v3 = vshrl.u32 %v461_v63, 23  ;;  %v2841_v17 = vand.u32 8388607, %v458_v9  ;;  %vm2931_vm15 = vcmp.le.f32.partialorder %v666_v55, 0.7853982 }
  0xb2   : > { %v2301_v1 = vadd.s32 4294967169, %v670_v59  ;;  %v2305_v2 = vadd.s32 4294967169, %v774_v61  ;;  %v674_v4 = vor.u32 8388608, %v673_v60  ;;  %v778_v7 = vor.u32 8388608, %v777_v62 }
  0xb3   : > { %v2293_v10 = vadd.s32 4294967169, %v462_v3 }
  0xb4   : > { %v676_v5 = vadd.s32 1, %v2301_v1  ;;  %v780_v8 = vadd.s32 1, %v2305_v2  ;;  %v2835_v14 = vshll.u32 %v674_v4, 8  ;;  %v2837_v16 = vshll.u32 %v778_v7, 8 }
  0xb5   : > { %v2843_v18 = vadd.s32 1, %v2293_v10 }
  0xb6   : > { %vm677_vm1 = vcmp.gt.s32.totalorder %v676_v5, 0  ;;  %vm781_vm2 = vcmp.gt.s32.totalorder %v780_v8, 0 }
  0xb7   : > { %v678_v11 = vsel %vm677_vm1, %v676_v5, 0  ;;  %v782_v15 = vsel %vm781_vm2, %v780_v8, 0  ;;  %vm469_vm7 = vcmp.gt.s32.totalorder %v2843_v18, 0 }
  0xb8   : > { %v679_v12 = vshrl.u32 %v678_v11, 5  ;;  %v680_v13 = vand.u32 31, %v678_v11  ;;  %v2847_v23 = vshrl.u32 %v782_v15, 5  ;;  %v784_v24 = vand.u32 31, %v782_v15 }
  0xba   : > { %v681_v20 = vsub.s32 32, %v680_v13  ;;  %v683_v22 = vshll.u32 %v2672_v21, %v680_v13  ;;  %v686_v26 = vshll.u32 %v2673_v25, %v680_v13  ;;  %v689_v28 = vshll.u32 %v2674_v27, %v680_v13 }
  0xbb   : > { %v692_v32 = vshll.u32 %v2675_v31, %v680_v13  ;;  %v695_v36 = vshll.u32 %v2676_v35, %v680_v13  ;;  %vm698_vm3 = vcmp.lt.s32.totalorder %v679_v12, 1  ;;  %vm699_vm4 = vcmp.lt.s32.totalorder %v679_v12, 2 }
  0xbc   : > { %v684_v41 = vshrl.u32 %v2673_v25, %v681_v20  ;;  %v687_v42 = vshrl.u32 %v2674_v27, %v681_v20  ;;  %v690_v47 = vshrl.u32 %v2675_v31, %v681_v20  ;;  %v682_v48 = vshrl.u32 %v2672_v21, %v681_v20 }
  0xbd   : > { %v693_v49 = vshrl.u32 %v2676_v35, %v681_v20  ;;  %v696_v51 = vshrl.u32 %v2677_v50, %v681_v20  ;;  %v785_v60 = vsub.s32 32, %v784_v24  ;;  %vm700_vm5 = vcmp.lt.s32.totalorder %v679_v12, 3 }
  0xbe   : > { %v685_v56 = vor.u32 %v684_v41, %v683_v22  ;;  %v688_v58 = vor.u32 %v687_v42, %v686_v26  ;;  %v691_v59 = vor.u32 %v690_v47, %v689_v28  ;;  %vm701_vm6 = vcmp.lt.s32.totalorder %v679_v12, 4 }
  0xbf   : > { %v694_v61 = vor.u32 %v693_v49, %v692_v32  ;;  %v697_v62 = vor.u32 %v696_v51, %v695_v36  ;;  %v787_v7 = vshll.u32 %v2672_v21, %v784_v24  ;;  %v788_v11 = vshrl.u32 %v2673_v25, %v785_v60 }
  0xc0   : > { %v702_v63 = vsel %vm698_vm3, %v682_v48, %v685_v56  ;;  %v703_v0 = vsel %vm701_vm6, %v691_v59, 2102212464  ;;  %v706_v1 = vsel %vm698_vm3, %v685_v56, %v688_v58  ;;  %v710_v2 = vsel %vm698_vm3, %v688_v58, %v691_v59 }
  0xc1   : > { %v704_v3 = vsel %vm700_vm5, %v688_v58, %v703_v0  ;;  %v707_v4 = vsel %vm701_vm6, %v694_v61, 920167782  ;;  %v711_v5 = vsel %vm701_vm6, %v697_v62, 1326507024  ;;  %v790_v13 = vshll.u32 %v2673_v25, %v784_v24 }
  0xc2   : > { %v708_v8 = vsel %vm700_vm5, %v691_v59, %v707_v4  ;;  %v712_v10 = vsel %vm700_vm5, %v694_v61, %v711_v5  ;;  %v705_v15 = vsel %vm699_vm4, %v702_v63, %v704_v3  ;;  %v791_v26 = vshrl.u32 %v2674_v27, %v785_v60 }
  0xc3   : > { %v709_v20 = vsel %vm699_vm4, %v706_v1, %v708_v8  ;;  %v713_v22 = vsel %vm699_vm4, %v710_v2, %v712_v10  ;;  %v789_v42 = vor.u32 %v788_v11, %v787_v7  ;;  %v793_v48 = vshll.u32 %v2674_v27, %v784_v24 }
  0xc4   : > { %v2871_v28 = vmul.u32.u64.low %v2835_v14, %v713_v22  ;;  %v2872_v32 = vmul.u32.u64.high %v2835_v14, %v713_v22, %v2871_v28  ;;  %v2875_v36 = vmul.u32.u64.low %v2835_v14, %v709_v20  ;;  %v2876_v41 = vmul.u32.u64.high %v2835_v14, %v709_v20, %v2875_v36 }
  0xc5   : > { %v792_v47 = vor.u32 %v791_v26, %v790_v13  ;;  %v794_v49 = vshrl.u32 %v2675_v31, %v785_v60  ;;  %v786_v51 = vshrl.u32 %v2672_v21, %v785_v60  ;;  %v796_v12 = vshll.u32 %v2675_v31, %v784_v24 }
  0xc6   : > { %v797_v56 = vshrl.u32 %v2676_v35, %v785_v60  ;;  %v800_v58 = vshrl.u32 %v2677_v50, %v785_v60  ;;  %v721_v59 = vmul.u32 %v2835_v14, %v705_v15  ;;  %v799_v62 = vshll.u32 %v2676_v35, %v784_v24 }
  0xc7   : > { %v795_v61 = vor.u32 %v794_v49, %v793_v48  ;;  %vm802_vm8 = vcmp.lt.s32.totalorder %v2847_v23, 1  ;;  %vm723_vm9 = vc.u32 %v2872_v32, %v2875_v36  ;;  %v724_v63 = vadd.s32 1, %v2876_v41 }
  0xc8   : > { %v798_v0 = vor.u32 %v797_v56, %v796_v12  ;;  %vm803_vm10 = vcmp.lt.s32.totalorder %v2847_v23, 2  ;;  %v801_v1 = vor.u32 %v800_v58, %v799_v62  ;;  %vm804_vm11 = vcmp.lt.s32.totalorder %v2847_v23, 3 }
  0xc9   : > { %vm805_vm12 = vcmp.lt.s32.totalorder %v2847_v23, 4  ;;  %v810_v60 = vsel %vm802_vm8, %v789_v42, %v792_v47  ;;  %v725_v14 = vsel %vm723_vm9, %v724_v63, %v2876_v41  ;;  %v814_v24 = vsel %vm802_vm8, %v792_v47, %v795_v61 }
  0xca   : > { %v807_v2 = vsel %vm805_vm12, %v795_v61, 2102212464  ;;  %v811_v3 = vsel %vm805_vm12, %v798_v0, 920167782  ;;  %v726_v4 = vadd.s32 %v725_v14, %v721_v59  ;;  %v806_v5 = vsel %vm802_vm8, %v786_v51, %v789_v42 }
  0xcb   : > { %v812_v7 = vsel %vm804_vm11, %v795_v61, %v811_v3  ;;  %v815_v8 = vsel %vm805_vm12, %v801_v1, 1326507024  ;;  %v808_v10 = vsel %vm804_vm11, %v792_v47, %v807_v2  ;;  %v470_v15 = vsel %vm469_vm7, %v2843_v18, 0 }
  0xcc   : > { %v813_v11 = vsel %vm803_vm10, %v810_v60, %v812_v7  ;;  %v816_v13 = vsel %vm804_vm11, %v798_v0, %v815_v8  ;;  %v727_v20 = vadd.s32 536870912, %v726_v4  ;;  %v562_v47 = vand.u32 2147483647, %v2832_v6 }
  0xcd   : > { %v817_v22 = vsel %vm803_vm10, %v814_v24, %v816_v13  ;;  %v2901_v26 = vmul.u32.u64.low %v2837_v16, %v813_v11  ;;  %v2902_v28 = vmul.u32.u64.high %v2837_v16, %v813_v11, %v2901_v26  ;;  %v809_v49 = vsel %vm803_vm10, %v806_v5, %v808_v10 }
  0xce   : > { %v2906_v41 = vmul.u32.u64.low %v2837_v16, %v817_v22  ;;  %v2907_v42 = vmul.u32.u64.high %v2837_v16, %v817_v22, %v2906_v41  ;;  %v728_v48 = vshrl.u32 %v727_v20, 30  ;;  %v466_v18 = vor.u32 8388608, %v2841_v17 }
  0xcf   : > { %v472_v51 = vand.u32 31, %v470_v15  ;;  %v828_v56 = vadd.s32 1, %v2902_v28  ;;  %v566_v59 = vshrl.u32 %v565_v19, 23  ;;  %v825_v61 = vmul.u32 %v2837_v16, %v809_v49 }
  0xd0   : > { %v729_v12 = vshll.u32 %v728_v48, 30  ;;  %vm827_vm13 = vc.u32 %v2907_v42, %v2901_v26  ;;  %v2921_v62 = vand.u32 8388607, %v562_v47  ;;  %v2927_v63 = vshll.u32 %v466_v18, 8 }
  0xd1   : > { %v473_v58 = vsub.s32 32, %v472_v51  ;;  %v829_v23 = vsel %vm827_vm13, %v828_v56, %v2902_v28  ;;  %v722_v16 = vadd.s32 %v2875_v36, %v2872_v32  ;;  %v2936_v1 = vshrl.u32 %v470_v15, 5 }
  0xd2   : > { %v2924_v17 = vsub.s32 %v726_v4, %v729_v12  ;;  %v830_v0 = vadd.s32 %v829_v23, %v825_v61  ;;  %v2297_v24 = vadd.s32 4294967169, %v566_v59  ;;  %v752_v4 = vsub.s32 4, %v728_v48 }
  0xd3   : > { %v476_v60 = vshrl.u32 %v2673_v25, %v473_v58  ;;  %v479_v2 = vshrl.u32 %v2674_v27, %v473_v58  ;;  %v482_v3 = vshrl.u32 %v2675_v31, %v473_v58  ;;  %v475_v55 = vshll.u32 %v2672_v21, %v472_v51 }
  0xd4   : > { %v732_v14 = vsub.s32 0, %v2924_v17  ;;  %v831_v5 = vadd.s32 536870912, %v830_v0  ;;  %v570_v7 = vor.u32 8388608, %v2921_v62  ;;  %v478_v36 = vshll.u32 %v2673_v25, %v472_v51 }
  0xd5   : > { %v481_v8 = vshll.u32 %v2674_v27, %v472_v51  ;;  %v485_v10 = vshrl.u32 %v2676_v35, %v473_v58  ;;  %v477_v13 = vor.u32 %v476_v60, %v475_v55  ;;  %v484_v15 = vshll.u32 %v2675_v31, %v472_v51 }
  0xd6   : > { %v2302_v32 = vmin.u32 %v732_v14, %v2924_v17  ;;  %v832_v11 = vshrl.u32 %v831_v5, 30  ;;  %v488_v20 = vshrl.u32 %v2677_v50, %v473_v58  ;;  %v480_v28 = vor.u32 %v479_v2, %v478_v36 }
  0xd7   : > { %v483_v41 = vor.u32 %v482_v3, %v481_v8  ;;  %v487_v49 = vshll.u32 %v2676_v35, %v472_v51  ;;  %v753_v18 = vsel %vm668_vm14, %v752_v4, %v728_v48  ;;  %v486_v56 = vor.u32 %v485_v10, %v484_v15 }
  0xd8   : > { %v734_v22 = vclz %v2302_v32  ;;  %v833_v12 = vshll.u32 %v832_v11, 30  ;;  %vm490_vm0 = vcmp.lt.s32.totalorder %v2936_v1, 1  ;;  %vm491_vm1 = vcmp.lt.s32.totalorder %v2936_v1, 2  ;;  %v420_v32 = vpop.permute.xlu1 %419 }
  0xd9   : > { %v489_v61 = vor.u32 %v488_v20, %v487_v49  ;;  %vm493_vm2 = vcmp.lt.s32.totalorder %v2936_v1, 4  ;;  %vm772_vm3 = vcmp.lt.s32.totalorder %v2819_v53, 0  ;;  %v474_v60 = vshrl.u32 %v2672_v21, %v473_v58 }
  0xda   : > { %v2303_v59 = vadd.s32 4294967294, %v734_v22  ;;  %v2957_v23 = vsub.s32 %v830_v0, %v833_v12  ;;  %vm492_vm4 = vcmp.lt.s32.totalorder %v2936_v1, 3  ;;  %v499_v48 = vsel %vm493_vm2, %v486_v56, 920167782 }
  0xdb   : > { %v755_v51 = vsel %vm2931_vm15, 0, %v753_v18  ;;  %v498_v14 = vsel %vm490_vm0, %v477_v13, %v480_v28  ;;  %v500_v2 = vsel %vm492_vm4, %v483_v41, %v499_v48  ;;  %v856_v4 = vsub.s32 4, %v832_v11 }
  0xdc   : > { %vm2304_vm5 = vcmp.lt.s32.totalorder %v2303_v59, 0  ;;  %v836_v0 = vsub.s32 0, %v2957_v23  ;;  %v502_v58 = vsel %vm490_vm0, %v480_v28, %v483_v41  ;;  %vm2974_vm6 = vcmp.le.f32.partialorder %v770_v57, 0.7853982 }
  0xdd   : > { %v737_v3 = vsel %vm2304_vm5, 0, %v2303_v59  ;;  %v495_v36 = vsel %vm493_vm2, %v483_v41, 2102212464  ;;  %v503_v8 = vsel %vm493_vm2, %v489_v61, 1326507024  ;;  %v501_v20 = vsel %vm491_vm1, %v498_v14, %v500_v2 }
  0xde   : > { %v738_v5 = vsub.s32 32, %v737_v3  ;;  %v742_v55 = vsub.s32 4294967266, %v737_v3  ;;  %v739_v10 = vshll.u32 %v2924_v17, %v737_v3  ;;  %v2306_v15 = vmin.u32 %v836_v0, %v2957_v23 }
  0xdf   : > { %v504_v22 = vsel %vm492_vm4, %v486_v56, %v503_v8  ;;  %v572_v12 = vadd.s32 1, %v2297_v24  ;;  %v759_v41 = vadd.s32 3, %v755_v51  ;;  %v494_v61 = vsel %vm490_vm0, %v474_v60, %v477_v13 }
  0xe0   : > { %v740_v57 = vshrl.u32 %v722_v16, %v738_v5  ;;  %v743_v49 = vadd.s32 127, %v742_v55  ;;  %v505_v18 = vsel %vm491_vm1, %v502_v58, %v504_v22  ;;  %v838_v59 = vclz %v2306_v15 }
  0xe1   : > { %v496_v17 = vsel %vm492_vm4, %v480_v28, %v495_v36  ;;  %v2995_v14 = vmul.u32.u64.low %v2927_v63, %v505_v18  ;;  %v2996_v2 = vmul.u32.u64.high %v2927_v63, %v505_v18, %v2995_v14  ;;  %vm573_vm7 = vcmp.gt.s32.totalorder %v572_v12, 0 }
  0xe2   : > { %v741_v48 = vor.u32 %v740_v57, %v739_v10  ;;  %v744_v3 = vshll.u32 %v743_v49, 23  ;;  %v2307_v16 = vadd.s32 4294967294, %v838_v59  ;;  %v826_v13 = vadd.s32 %v2901_v26, %v2907_v42 }
  0xe3   : > { %v2999_v56 = vmul.u32.u64.low %v2927_v63, %v501_v20  ;;  %v3000_v0 = vmul.u32.u64.high %v2927_v63, %v501_v20, %v2999_v56  ;;  %v857_v28 = vsel %vm772_vm3, %v856_v4, %v832_v11  ;;  %v574_v60 = vsel %vm573_vm7, %v572_v12, 0 }
  0xe4   : > { %v745_v24 = vor.u32 4788187, %v744_v3  ;;  %v3007_v51 = vand.u32 3, %v759_v41  ;;  %vm2308_vm8 = vcmp.lt.s32.totalorder %v2307_v16, 0  ;;  %v497_v58 = vsel %vm491_vm1, %v494_v61, %v496_v17 }
  0xe5   : > { %v576_v5 = vand.u32 31, %v574_v60  ;;  %v748_v36 = vcvt.s32.f32 %v741_v48  ;;  %v841_v8 = vsel %vm2308_vm8, 0, %v2307_v16  ;;  %vm515_vm9 = vc.u32 %v2996_v2, %v2999_v56 }
  0xe6   : > { %v746_v55 = vand.u32 2147483647, %v745_v24  ;;  %v842_v10 = vsub.s32 32, %v841_v8  ;;  %v846_v15 = vsub.s32 4294967266, %v841_v8  ;;  %v859_v26 = vsel %vm2974_vm6, 0, %v857_v28 }
  0xe7   : > { %v516_v42 = vadd.s32 1, %v3000_v0  ;;  %v513_v4 = vmul.u32 %v2927_v63, %v497_v58  ;;  %v3017_v20 = vshrl.u32 %v574_v60, 5  ;;  %v577_v1 = vsub.s32 32, %v576_v5 }
  0xe8   : > { %v749_v11 = vmul.f32 %v748_v36, %v746_v55  ;;  %v843_v22 = vshll.u32 %v2957_v23, %v841_v8  ;;  %v844_v57 = vshrl.u32 %v826_v13, %v842_v10  ;;  %v847_v49 = vadd.s32 127, %v846_v15 }
  0xe9   : > { %v517_v18 = vsel %vm515_vm9, %v516_v42, %v3000_v0  ;;  %v579_v59 = vshll.u32 %v2672_v21, %v576_v5  ;;  %v580_v61 = vshrl.u32 %v2673_v25, %v577_v1  ;;  %v582_v3 = vshll.u32 %v2673_v25, %v576_v5 }
  0xea   : > { %v750_v12 = vxor.u32 2147483648, %v749_v11  ;;  %v518_v41 = vadd.s32 %v517_v18, %v513_v4  ;;  %v845_v17 = vor.u32 %v844_v57, %v843_v22  ;;  %v848_v48 = vshll.u32 %v847_v49, 23 }
  0xeb   : > { %v583_v63 = vshrl.u32 %v2674_v27, %v577_v1  ;;  %v585_v16 = vshll.u32 %v2674_v27, %v576_v5  ;;  %v586_v0 = vshrl.u32 %v2675_v31, %v577_v1  ;;  %v581_v28 = vor.u32 %v580_v61, %v579_v59 }
  0xec   : > { %v751_v14 = vsel %vm668_vm14, %v750_v12, %v749_v11  ;;  %v519_v23 = vadd.s32 536870912, %v518_v41  ;;  %v849_v13 = vor.u32 4788187, %v848_v48  ;;  %v588_v60 = vshll.u32 %v2675_v31, %v576_v5 }
  0xed   : > { %v754_v24 = vsel %vm2931_vm15, %v2817_v52, %v751_v14  ;;  %v852_v58 = vcvt.s32.f32 %v845_v17  ;;  %v589_v36 = vshrl.u32 %v2676_v35, %v577_v1  ;;  %v584_v10 = vor.u32 %v583_v63, %v582_v3 }
  0xee   : > { %2511 = vcosq.f32 %v754_v24  ;;  %v3033_v55 = vshrl.u32 %v519_v23, 30  ;;  %v850_v8 = vand.u32 2147483647, %v849_v13  ;;  %v592_v15 = vshrl.u32 %v2677_v50, %v577_v1 }
  0xef   : > { %2513 = vsinq.f32 %v754_v24  ;;  %v590_v11 = vor.u32 %v589_v36, %v588_v60  ;;  %v587_v4 = vor.u32 %v586_v0, %v585_v16  ;;  %v591_v22 = vshll.u32 %v2676_v35, %v576_v5 }
  0xf0   : > { %v521_v42 = vshll.u32 %v3033_v55, 30  ;;  %v853_v19 = vmul.f32 %v852_v58, %v850_v8  ;;  %vm765_vm10 = vcmp.eq.s32.totalorder %v3007_v51, 2  ;;  %v863_v57 = vadd.s32 3, %v859_v26 }
  0xf1   : > { %vm594_vm11 = vcmp.lt.s32.totalorder %v3017_v20, 1  ;;  %v3045_v18 = vshll.u32 %v570_v7, 8  ;;  %v593_v59 = vor.u32 %v592_v15, %v591_v22  ;;  %vm597_vm12 = vcmp.lt.s32.totalorder %v3017_v20, 4 }
  0xf2   : > { %v3040_v49 = vsub.s32 %v518_v41, %v521_v42  ;;  %v854_v12 = vxor.u32 2147483648, %v853_v19  ;;  %v602_v61 = vsel %vm594_vm11, %v581_v28, %v584_v10  ;;  %vm761_vm13 = vcmp.lt.s32.totalorder %v3007_v51, 2 }
  0xf3   : > { %v578_v26 = vshrl.u32 %v2672_v21, %v577_v1  ;;  %vm596_vm14 = vcmp.lt.s32.totalorder %v3017_v20, 3  ;;  %v603_v62 = vsel %vm597_vm12, %v590_v11, 920167782  ;;  %vm758_vm15 = vweird.f32 %v2817_v52 }
  0xf4   : > { %v524_v5 = vsub.s32 0, %v3040_v49  ;;  %v855_v7 = vsel %vm772_vm3, %v854_v12, %v853_v19  ;;  %vm460_vm0 = vcmp.lt.s32.totalorder %v2821_v54, 0  ;;  %vm595_vm1 = vcmp.lt.s32.totalorder %v3017_v20, 2 }
  0xf5   : > { %v599_v41 = vsel %vm597_vm12, %v587_v4, 2102212464  ;;  %v604_v1 = vsel %vm596_vm14, %v587_v4, %v603_v62  ;;  %v858_v17 = vsel %vm2974_vm6, %v2819_v53, %v855_v7  ;;  %v606_v63 = vsel %vm594_vm11, %v584_v10, %v587_v4 }
  0xf6   : > { %v2294_v48 = vmin.u32 %v524_v5, %v3040_v49  ;;  %v605_v3 = vsel %vm595_vm1, %v602_v61, %v604_v1  ;;  %2515 = vcosq.f32 %v858_v17  ;;  %v607_v14 = vsel %vm597_vm12, %v593_v59, 1326507024 }
  0xf7   : > { %v3077_v23 = vmul.u32.u64.low %v3045_v18, %v605_v3  ;;  %v3078_v16 = vmul.u32.u64.high %v3045_v18, %v605_v3, %v3077_v23  ;;  %2517 = vsinq.f32 %v858_v17  ;;  %v3081_v24 = vand.u32 3, %v863_v57 }
  0xf8   : > { %v2512_v0 = vpop.eup %2511  ;;  %vm3085_vm2 = vcmp.le.f32.partialorder %v458_v9, 0.7853982  ;;  %v526_v60 = vclz %v2294_v48  ;;  %v544_v58 = vsub.s32 4, %v3033_v55  ;;  %v598_v15 = vsel %vm594_vm11, %v578_v26, %v581_v28 }
  0xf9   : > { %v2514_v36 = vpop.eup %2513  ;;  %v766_v8 = vxor.u32 2147483648, %v2512_v0  ;;  %v600_v42 = vsel %vm596_vm14, %v584_v10, %v599_v41  ;;  %v608_v19 = vsel %vm596_vm14, %v590_v11, %v607_v14  ;;  %v3101_v57 = vadd.f32 %v420_v32, %v2797_v33 }
  0xfa   : > { %v763_v9 = vxor.u32 2147483648, %v2514_v36  ;;  %v2295_v4 = vadd.s32 4294967294, %v526_v60  ;;  %v609_v22 = vsel %vm595_vm1, %v606_v63, %v608_v19  ;;  %vm762_vm3 = vcmp.eq.s32.totalorder %v3007_v51, 0 }
  0xfb   : > { %v767_v12 = vsel %vm765_vm10, %v766_v8, %v2514_v36  ;;  %v3107_v28 = vmul.u32.u64.low %v3045_v18, %v609_v22  ;;  %v3108_v59 = vmul.u32.u64.high %v3045_v18, %v609_v22, %v3107_v28  ;;  %v601_v11 = vsel %vm595_vm1, %v598_v15, %v600_v42 }
  0xfc   : > { %v764_v10 = vsel %vm762_vm3, %v2512_v0, %v763_v9  ;;  %vm2296_vm4 = vcmp.lt.s32.totalorder %v2295_v4, 0  ;;  %v620_v61 = vadd.s32 1, %v3078_v16  ;;  %vm865_vm5 = vcmp.lt.s32.totalorder %v3081_v24, 2 }
  0xfd   : > { %v768_v33 = vsel %vm761_vm13, %v764_v10, %v767_v12  ;;  %v514_v5 = vadd.s32 %v2999_v56, %v2996_v2  ;;  %v529_v26 = vsel %vm2296_vm4, 0, %v2295_v4  ;;  %v1085_v62 = vand.u32 2139095040, %v3101_v57 }
  0xfe   : > { %v769_v7 = vsel %vm758_vm15, nan, %v768_v33  ;;  %vm862_vm6 = vweird.f32 %v2819_v53  ;;  %v530_v20 = vsub.s32 32, %v529_v26  ;;  %v534_v41 = vsub.s32 4294967266, %v529_v26 }
  0xff   : > { %v545_v51 = vsel %vm460_vm0, %v544_v58, %v3033_v55  ;;  %2124 = vst [vmem:[%s3125_s23 + $0x10] sm:$0xff] %v769_v7  ;;  %v617_v2 = vmul.u32 %v3045_v18, %v601_v11  ;;  %vm619_vm7 = vc.u32 %v3108_v59, %v3077_v23  ;;  %v1082_v52 = vand.u32 2147483647, %v3101_v57 }
 0x100   : > { %v1086_v56 = vshrl.u32 %v1085_v62, 23  ;;  %v531_v1 = vshll.u32 %v3040_v49, %v529_v26  ;;  %v532_v17 = vshrl.u32 %v514_v5, %v530_v20  ;;  %v535_v48 = vadd.s32 127, %v534_v41  ;;  %v2516_v63 = vpop.eup %2515 }
 0x101   : > { %v621_v3 = vsel %vm619_vm7, %v620_v61, %v3078_v16  ;;  %v547_v55 = vsel %vm3085_vm2, 0, %v545_v51  ;;  %v3137_v0 = vadd.f32 %v420_v32, %v2799_v34  ;;  %v2518_v60 = vpop.eup %2517  ;;  %vm869_vm8 = vcmp.eq.s32.totalorder %v3081_v24, 2 }
 0x102   : > { %v622_v14 = vadd.s32 %v621_v3, %v617_v2  ;;  %v2317_v18 = vadd.s32 4294967169, %v1086_v56  ;;  %v870_v58 = vxor.u32 2147483648, %v2516_v63  ;;  %v533_v36 = vor.u32 %v532_v17, %v531_v1 }
 0x103   : > { %v536_v8 = vshll.u32 %v535_v48, 23  ;;  %v867_v49 = vxor.u32 2147483648, %v2518_v60  ;;  %v1089_v16 = vand.u32 8388607, %v1082_v52  ;;  %vm866_vm9 = vcmp.eq.s32.totalorder %v3081_v24, 0 }
 0x104   : > { %v623_v15 = vadd.s32 536870912, %v622_v14  ;;  %v1092_v42 = vadd.s32 1, %v2317_v18  ;;  %v871_v19 = vsel %vm869_vm8, %v870_v58, %v2518_v60  ;;  %v551_v34 = vadd.s32 3, %v547_v55  ;;  %v415_v18 = vpop.permute.xlu0 %414 }
 0x105   : > { %v537_v9 = vor.u32 4788187, %v536_v8  ;;  %v868_v32 = vsel %vm866_vm9, %v2516_v63, %v867_v49  ;;  %v1186_v22 = vand.u32 2147483647, %v3137_v0  ;;  %v540_v10 = vcvt.s32.f32 %v533_v36 }
 0x106   : > { %v624_v4 = vshrl.u32 %v623_v15, 30  ;;  %vm1093_vm10 = vcmp.gt.s32.totalorder %v1092_v42, 0  ;;  %v872_v12 = vsel %vm865_vm5, %v868_v32, %v871_v19  ;;  %v1090_v5 = vor.u32 8388608, %v1089_v16 }
 0x107   : > { %v538_v28 = vand.u32 2147483647, %v537_v9  ;;  %v1094_v11 = vsel %vm1093_vm10, %v1092_v42, 0  ;;  %v873_v61 = vsel %vm862_vm6, nan, %v872_v12  ;;  %v1189_v26 = vand.u32 2139095040, %v3137_v0 }
 0x108   : > { %v625_v33 = vshll.u32 %v624_v4, 30  ;;  %2125 = vst [vmem:[%s3125_s23 + $0x18] sm:$0xff] %v873_v61  ;;  %v1096_v7 = vand.u32 31, %v1094_v11  ;;  %v3150_v20 = vand.u32 3, %v551_v34  ;;  %vm564_vm11 = vcmp.lt.s32.totalorder %v2832_v6, 0 }
 0x109   : > { %v541_v62 = vmul.f32 %v540_v10, %v538_v28  ;;  %v618_v24 = vadd.s32 %v3077_v23, %v3108_v59  ;;  %v648_v2 = vsub.s32 4, %v624_v4  ;;  %v1095_v53 = vshrl.u32 %v1094_v11, 5 }
 0x10a   : > { %v3155_v41 = vsub.s32 %v622_v14, %v625_v33  ;;  %v1097_v56 = vsub.s32 32, %v1096_v7  ;;  %v3158_v17 = vshll.u32 %v1090_v5, 8  ;;  %v1190_v48 = vshrl.u32 %v1189_v26, 23 }
 0x10b   : > { %v542_v51 = vxor.u32 2147483648, %v541_v62  ;;  %v3162_v3 = vand.u32 8388607, %v1186_v22  ;;  %v1099_v23 = vshll.u32 %v2672_v21, %v1096_v7  ;;  %vm3174_vm12 = vcmp.le.f32.partialorder %v562_v47, 0.7853982 }
 0x10c   : > { %v628_v1 = vsub.s32 0, %v3155_v41  ;;  %v1100_v59 = vshrl.u32 %v2673_v25, %v1097_v56  ;;  %v1103_v55 = vshrl.u32 %v2674_v27, %v1097_v56  ;;  %v1102_v58 = vshll.u32 %v2673_v25, %v1096_v7 }
 0x10d   : > { %v543_v63 = vsel %vm460_vm0, %v542_v51, %v541_v62  ;;  %v1106_v36 = vshrl.u32 %v2675_v31, %v1097_v56  ;;  %v649_v8 = vsel %vm564_vm11, %v648_v2, %v624_v4  ;;  %v1105_v49 = vshll.u32 %v2674_v27, %v1096_v7 }
 0x10e   : > { %v546_v14 = vsel %vm3085_vm2, %v2821_v54, %v543_v63  ;;  %v2298_v60 = vmin.u32 %v628_v1, %v3155_v41  ;;  %vm1114_vm13 = vcmp.lt.s32.totalorder %v1095_v53, 1  ;;  %v1101_v15 = vor.u32 %v1100_v59, %v1099_v23 }
 0x10f   : > { %2519 = vcosq.f32 %v546_v14  ;;  %v1104_v47 = vor.u32 %v1103_v55, %v1102_v58  ;;  %v1098_v16 = vshrl.u32 %v2672_v21, %v1097_v56  ;;  %v1107_v42 = vor.u32 %v1106_v36, %v1105_v49 }
 0x110   : > { %2521 = vsinq.f32 %v546_v14  ;;  %v630_v13 = vclz %v2298_v60  ;;  %v1108_v19 = vshll.u32 %v2675_v31, %v1096_v7  ;;  %v1109_v9 = vshrl.u32 %v2676_v35, %v1097_v56 }
 0x111   : > { %v1111_v32 = vshll.u32 %v2676_v35, %v1096_v7  ;;  %v1112_v12 = vshrl.u32 %v2677_v50, %v1097_v56  ;;  %vm1117_vm14 = vcmp.lt.s32.totalorder %v1095_v53, 4  ;;  %vm557_vm15 = vcmp.eq.s32.totalorder %v3150_v20, 2 }
 0x112   : > { %v2299_v34 = vadd.s32 4294967294, %v630_v13  ;;  %v1110_v4 = vor.u32 %v1109_v9, %v1108_v19  ;;  %vm1115_vm0 = vcmp.lt.s32.totalorder %v1095_v53, 2  ;;  %vm1116_vm1 = vcmp.lt.s32.totalorder %v1095_v53, 3 }
 0x113   : > { %v1119_v28 = vsel %vm1117_vm14, %v1107_v42, 2102212464  ;;  %v1113_v10 = vor.u32 %v1112_v12, %v1111_v32  ;;  %v1118_v11 = vsel %vm1114_vm13, %v1098_v16, %v1101_v15  ;;  %v1122_v61 = vsel %vm1114_vm13, %v1101_v15, %v1104_v47 }
 0x114   : > { %vm2300_vm2 = vcmp.lt.s32.totalorder %v2299_v34, 0  ;;  %v1120_v5 = vsel %vm1116_vm1, %v1104_v47, %v1119_v28  ;;  %v1123_v26 = vsel %vm1117_vm14, %v1110_v4, 920167782  ;;  %v2321_v62 = vadd.s32 4294967169, %v1190_v48 }
 0x115   : > { %v633_v33 = vsel %vm2300_vm2, 0, %v2299_v34  ;;  %vm550_vm3 = vweird.f32 %v2821_v54  ;;  %v1124_v2 = vsel %vm1116_vm1, %v1107_v42, %v1123_v26  ;;  %v1126_v56 = vsel %vm1114_vm13, %v1104_v47, %v1107_v42 }
 0x116   : > { %v634_v7 = vsub.s32 32, %v633_v33  ;;  %v638_v51 = vsub.s32 4294967266, %v633_v33  ;;  %v635_v1 = vshll.u32 %v3155_v41, %v633_v33  ;;  %v651_v63 = vsel %vm3174_vm12, 0, %v649_v8 }
 0x117   : > { %v1125_v23 = vsel %vm1115_vm0, %v1122_v61, %v1124_v2  ;;  %v1127_v59 = vsel %vm1117_vm14, %v1113_v10, 1326507024  ;;  %v1196_v60 = vadd.s32 1, %v2321_v62  ;;  %v1121_v36 = vsel %vm1115_vm0, %v1118_v11, %v1120_v5 }
 0x118   : > { %v636_v55 = vshrl.u32 %v618_v24, %v634_v7  ;;  %v639_v14 = vadd.s32 127, %v638_v51  ;;  %v1128_v48 = vsel %vm1116_vm1, %v1110_v4, %v1127_v59  ;;  %vm553_vm5 = vcmp.lt.s32.totalorder %v3150_v20, 2 }
 0x119   : > { %v2520_v58 = vpop.eup %2519  ;;  %v1129_v49 = vsel %vm1115_vm0, %v1126_v56, %v1128_v48  ;;  %v3207_v13 = vmul.u32.u64.low %v3158_v17, %v1125_v23  ;;  %v3208_v41 = vmul.u32.u64.high %v3158_v17, %v1125_v23, %v3207_v13  ;;  %vm1197_vm4 = vcmp.gt.s32.totalorder %v1196_v60, 0 }
 0x11a   : > { %v2522_v8 = vpop.eup %2521  ;;  %v558_v15 = vxor.u32 2147483648, %v2520_v58  ;;  %v637_v47 = vor.u32 %v636_v55, %v635_v1  ;;  %v640_v16 = vshll.u32 %v639_v14, 23  ;;  %v1198_v9 = vsel %vm1197_vm4, %v1196_v60, 0 }
 0x11b   : > { %v555_v24 = vxor.u32 2147483648, %v2522_v8  ;;  %v3212_v42 = vmul.u32.u64.low %v3158_v17, %v1129_v49  ;;  %v3213_v19 = vmul.u32.u64.high %v3158_v17, %v1129_v49, %v3212_v42  ;;  %vm554_vm6 = vcmp.eq.s32.totalorder %v3150_v20, 0 }
 0x11c   : > { %v559_v53 = vsel %vm557_vm15, %v558_v15, %v2522_v8  ;;  %v641_v34 = vor.u32 4788187, %v640_v16  ;;  %v655_v12 = vadd.s32 3, %v651_v63  ;;  %v1140_v4 = vadd.s32 1, %v3208_v41 }
 0x11d   : > { %v556_v32 = vsel %vm554_vm6, %v2520_v58, %v555_v24  ;;  %v1200_v28 = vand.u32 31, %v1198_v9  ;;  %v644_v61 = vcvt.s32.f32 %v637_v47  ;;  %v1137_v33 = vmul.u32 %v3158_v17, %v1121_v36 }
 0x11e   : > { %v560_v10 = vsel %vm553_vm5, %v556_v32, %v559_v53  ;;  %v642_v11 = vand.u32 2147483647, %v641_v34  ;;  %vm1139_vm7 = vc.u32 %v3213_v19, %v3207_v13  ;;  %v1194_v20 = vor.u32 8388608, %v3162_v3 }
 0x11f   : > { %v561_v5 = vsel %vm550_vm3, nan, %v560_v10  ;;  %v1201_v26 = vsub.s32 32, %v1200_v28  ;;  %v1141_v7 = vsel %vm1139_vm7, %v1140_v4, %v3208_v41  ;;  %v1199_v51 = vshrl.u32 %v1198_v9, 5 }
 0x120   : > { %v645_v62 = vmul.f32 %v644_v61, %v642_v11  ;;  %2122 = vst [vmem:[%s3125_s23] sm:$0xff] %v561_v5  ;;  %v1203_v2 = vshll.u32 %v2672_v21, %v1200_v28  ;;  %v1142_v56 = vadd.s32 %v1141_v7, %v1137_v33  ;;  %v1206_v17 = vshll.u32 %v2673_v25, %v1200_v28 }
 0x121   : > { %v1204_v1 = vshrl.u32 %v2673_v25, %v1201_v26  ;;  %v1207_v54 = vshrl.u32 %v2674_v27, %v1201_v26  ;;  %v1209_v23 = vshll.u32 %v2674_v27, %v1200_v28  ;;  %v1210_v3 = vshrl.u32 %v2675_v31, %v1201_v26 }
 0x122   : > { %v646_v63 = vxor.u32 2147483648, %v645_v62  ;;  %v1212_v59 = vshll.u32 %v2675_v31, %v1200_v28  ;;  %v1143_v55 = vadd.s32 536870912, %v1142_v56  ;;  %v1213_v60 = vshrl.u32 %v2676_v35, %v1201_v26 }
 0x123   : > { %v1205_v14 = vor.u32 %v1204_v1, %v1203_v2  ;;  %v1208_v48 = vor.u32 %v1207_v54, %v1206_v17  ;;  %v1211_v36 = vor.u32 %v1210_v3, %v1209_v23  ;;  %v1215_v49 = vshll.u32 %v2676_v35, %v1200_v28 }
 0x124   : > { %v647_v58 = vsel %vm564_vm11, %v646_v63, %v645_v62  ;;  %v1216_v41 = vshrl.u32 %v2677_v50, %v1201_v26  ;;  %v3243_v15 = vand.u32 3, %v655_v12  ;;  %v1144_v47 = vshrl.u32 %v1143_v55, 30 }
 0x125   : > { %v650_v8 = vsel %vm3174_vm12, %v2832_v6, %v647_v58  ;;  %v1214_v16 = vor.u32 %v1213_v60, %v1212_v59  ;;  %vm1218_vm8 = vcmp.lt.s32.totalorder %v1199_v51, 1  ;;  %v1234_v42 = vshll.u32 %v1194_v20, 8 }
 0x126   : > { %2523 = vcosq.f32 %v650_v8  ;;  %v1217_v24 = vor.u32 %v1216_v41, %v1215_v49  ;;  %v1145_v9 = vshll.u32 %v1144_v47, 30  ;;  %v1202_v53 = vshrl.u32 %v2672_v21, %v1201_v26 }
 0x127   : > { %2525 = vsinq.f32 %v650_v8  ;;  %vm1221_vm9 = vcmp.lt.s32.totalorder %v1199_v51, 4  ;;  %vm1220_vm10 = vcmp.lt.s32.totalorder %v1199_v51, 3  ;;  %v1226_v32 = vsel %vm1218_vm8, %v1205_v14, %v1208_v48 }
 0x128   : > { %v1223_v34 = vsel %vm1221_vm9, %v1211_v36, 2102212464  ;;  %v1227_v4 = vsel %vm1221_vm9, %v1214_v16, 920167782  ;;  %v3247_v28 = vsub.s32 %v1142_v56, %v1145_v9  ;;  %vm1219_vm11 = vcmp.lt.s32.totalorder %v1199_v51, 2 }
 0x129   : > { %v1228_v12 = vsel %vm1220_vm10, %v1211_v36, %v1227_v4  ;;  %v1230_v10 = vsel %vm1218_vm8, %v1208_v48, %v1211_v36  ;;  %v1168_v11 = vsub.s32 4, %v1144_v47  ;;  %v1222_v61 = vsel %vm1218_vm8, %v1202_v53, %v1205_v14 }
 0x12a   : > { %v1229_v33 = vsel %vm1219_vm11, %v1226_v32, %v1228_v12  ;;  %v1231_v5 = vsel %vm1221_vm9, %v1217_v24, 1326507024  ;;  %v1148_v20 = vsub.s32 0, %v3247_v28  ;;  %v1224_v26 = vsel %vm1220_vm10, %v1208_v48, %v1223_v34 }
 0x12b   : > { %v1232_v62 = vsel %vm1220_vm10, %v1214_v16, %v1231_v5  ;;  %v3254_v7 = vadd.f32 %v415_v18, %v2793_v29  ;;  %v3257_v56 = vmul.u32.u64.low %v1234_v42, %v1229_v33  ;;  %v3258_v1 = vmul.u32.u64.high %v1234_v42, %v1229_v33, %v3257_v56 }
 0x12c   : > { %v1233_v2 = vsel %vm1219_vm11, %v1230_v10, %v1232_v62  ;;  %vm654_vm12 = vweird.f32 %v2832_v6  ;;  %v2318_v17 = vmin.u32 %v1148_v20, %v3247_v28  ;;  %vm3267_vm13 = vcmp.le.f32.partialorder %v1082_v52, 0.7853982 }
 0x12d   : > { %v3262_v54 = vmul.u32.u64.low %v1234_v42, %v1233_v2  ;;  %v3263_v63 = vmul.u32.u64.high %v1234_v42, %v1233_v2, %v3262_v54  ;;  %vm1084_vm14 = vcmp.lt.s32.totalorder %v3101_v57, 0  ;;  %v1225_v29 = vsel %vm1219_vm11, %v1222_v61, %v1224_v26 }
 0x12e   : > { %v877_v3 = vand.u32 2139095040, %v3254_v7  ;;  %vm657_vm15 = vcmp.lt.s32.totalorder %v3243_v15, 2  ;;  %vm658_vm0 = vcmp.eq.s32.totalorder %v3243_v15, 0  ;;  %v1150_v59 = vclz %v2318_v17 }
 0x12f   : > { %v1169_v55 = vsel %vm1084_vm14, %v1168_v11, %v1144_v47  ;;  %vm661_vm1 = vcmp.eq.s32.totalorder %v3243_v15, 2  ;;  %v1244_v52 = vadd.s32 1, %v3258_v1  ;;  %v874_v48 = vand.u32 2147483647, %v3254_v7 }
 0x130   : > { %v2524_v14 = vpop.eup %2523  ;;  %v878_v60 = vshrl.u32 %v877_v3, 23  ;;  %v2319_v36 = vadd.s32 4294967294, %v1150_v59  ;;  %v1241_v49 = vmul.u32 %v1234_v42, %v1225_v29  ;;  %vm1243_vm2 = vc.u32 %v3263_v63, %v3257_v56 }
 0x131   : > { %v2526_v51 = vpop.eup %2525  ;;  %v662_v58 = vxor.u32 2147483648, %v2524_v14  ;;  %v1171_v8 = vsel %vm3267_vm13, 0, %v1169_v55  ;;  %v1245_v47 = vsel %vm1243_vm2, %v1244_v52, %v3258_v1  ;;  %v1138_v9 = vadd.s32 %v3207_v13, %v3213_v19 }
 0x132   : > { %v659_v41 = vxor.u32 2147483648, %v2526_v51  ;;  %v2309_v16 = vadd.s32 4294967169, %v878_v60  ;;  %vm2320_vm3 = vcmp.lt.s32.totalorder %v2319_v36, 0  ;;  %v1246_v53 = vadd.s32 %v1245_v47, %v1241_v49 }
 0x133   : > { %v663_v24 = vsel %vm661_vm1, %v662_v58, %v2526_v51  ;;  %v1153_v42 = vsel %vm2320_vm3, 0, %v2319_v36  ;;  %v881_v32 = vand.u32 8388607, %v874_v48  ;;  %v1175_v61 = vadd.s32 3, %v1171_v8 }
 0x134   : > { %v660_v34 = vsel %vm658_vm0, %v2524_v14, %v659_v41  ;;  %v884_v4 = vadd.s32 1, %v2309_v16  ;;  %v1154_v10 = vsub.s32 32, %v1153_v42  ;;  %v1158_v11 = vsub.s32 4294967266, %v1153_v42 }
 0x135   : > { %v664_v12 = vsel %vm657_vm15, %v660_v34, %v663_v24  ;;  %v1247_v13 = vadd.s32 536870912, %v1246_v53  ;;  %v3296_v19 = vadd.f32 %v415_v18, %v2795_v30  ;;  %v1155_v5 = vshll.u32 %v3247_v28, %v1153_v42 }
 0x136   : > { %v665_v33 = vsel %vm654_vm12, nan, %v664_v12  ;;  %vm885_vm4 = vcmp.gt.s32.totalorder %v884_v4, 0  ;;  %v1156_v20 = vshrl.u32 %v1138_v9, %v1154_v10  ;;  %v1159_v26 = vadd.s32 127, %v1158_v11 }
 0x137   : > { %2123 = vst [vmem:[%s3125_s23 + $0x8] sm:$0xff] %v665_v33  ;;  %v886_v62 = vsel %vm885_vm4, %v884_v4, 0  ;;  %v1248_v2 = vshrl.u32 %v1247_v13, 30  ;;  %v882_v15 = vor.u32 8388608, %v881_v32  ;;  %vm1188_vm5 = vcmp.lt.s32.totalorder %v3137_v0, 0 }
 0x138   : > { %v888_v1 = vand.u32 31, %v886_v62  ;;  %v1157_v17 = vor.u32 %v1156_v20, %v1155_v5  ;;  %v1160_v54 = vshll.u32 %v1159_v26, 23  ;;  %v3301_v59 = vand.u32 3, %v1175_v61 }
 0x139   : > { %v1249_v6 = vshll.u32 %v1248_v2, 30  ;;  %v1242_v30 = vadd.s32 %v3257_v56, %v3263_v63  ;;  %v978_v18 = vand.u32 2147483647, %v3296_v19  ;;  %v887_v55 = vshrl.u32 %v886_v62, 5 }
 0x13a   : > { %v889_v29 = vsub.s32 32, %v888_v1  ;;  %v1161_v3 = vor.u32 4788187, %v1160_v54  ;;  %v3308_v52 = vshll.u32 %v882_v15, 8  ;;  %v1164_v51 = vcvt.s32.f32 %v1157_v17 }
 0x13b   : > { %v3305_v28 = vsub.s32 %v1246_v53, %v1249_v6  ;;  %v1272_v41 = vsub.s32 4, %v1248_v2  ;;  %v891_v56 = vshll.u32 %v2672_v21, %v888_v1  ;;  %v894_v63 = vshll.u32 %v2673_v25, %v888_v1 }
 0x13c   : > { %v892_v14 = vshrl.u32 %v2673_v25, %v889_v29  ;;  %v1162_v60 = vand.u32 2147483647, %v1161_v3  ;;  %v895_v58 = vshrl.u32 %v2674_v27, %v889_v29  ;;  %v898_v36 = vshrl.u32 %v2675_v31, %v889_v29 }
 0x13d   : > { %v1252_v49 = vsub.s32 0, %v3305_v28  ;;  %v897_v47 = vshll.u32 %v2674_v27, %v888_v1  ;;  %v900_v16 = vshll.u32 %v2675_v31, %v888_v1  ;;  %v901_v24 = vshrl.u32 %v2676_v35, %v889_v29 }
 0x13e   : > { %v1165_v8 = vmul.f32 %v1164_v51, %v1162_v60  ;;  %v893_v53 = vor.u32 %v892_v14, %v891_v56  ;;  %v896_v34 = vor.u32 %v895_v58, %v894_v63  ;;  %v904_v42 = vshrl.u32 %v2677_v50, %v889_v29 }
 0x13f   : > { %v2322_v9 = vmin.u32 %v1252_v49, %v3305_v28  ;;  %v899_v4 = vor.u32 %v898_v36, %v897_v47  ;;  %v902_v12 = vor.u32 %v901_v24, %v900_v16  ;;  %v903_v10 = vshll.u32 %v2676_v35, %v888_v1 }
 0x140   : > { %v1166_v32 = vxor.u32 2147483648, %v1165_v8  ;;  %v1273_v61 = vsel %vm1188_vm5, %v1272_v41, %v1248_v2  ;;  %v890_v33 = vshrl.u32 %v2672_v21, %v889_v29  ;;  %v981_v13 = vand.u32 2139095040, %v3296_v19 }
 0x141   : > { %v1254_v11 = vclz %v2322_v9  ;;  %v905_v20 = vor.u32 %v904_v42, %v903_v10  ;;  %vm906_vm6 = vcmp.lt.s32.totalorder %v887_v55, 1  ;;  %vm907_vm7 = vcmp.lt.s32.totalorder %v887_v55, 2 }
 0x142   : > { %v1167_v5 = vsel %vm1084_vm14, %v1166_v32, %v1165_v8  ;;  %vm908_vm8 = vcmp.lt.s32.totalorder %v887_v55, 3  ;;  %vm909_vm9 = vcmp.lt.s32.totalorder %v887_v55, 4  ;;  %v914_v2 = vsel %vm906_vm6, %v893_v53, %v896_v34  ;;  %v3364_v55 = vpop.permute.xlu1 %429 }
 0x143   : > { %v1170_v26 = vsel %vm3267_vm13, %v3101_v57, %v1167_v5  ;;  %v2323_v62 = vadd.s32 4294967294, %v1254_v11  ;;  %v911_v15 = vsel %vm909_vm9, %v899_v4, 2102212464  ;;  %v915_v1 = vsel %vm909_vm9, %v902_v12, 920167782 }
 0x144   : > { %2527 = vcosq.f32 %v1170_v26  ;;  %v910_v17 = vsel %vm906_vm6, %v890_v33, %v893_v53  ;;  %v916_v54 = vsel %vm908_vm8, %v899_v4, %v915_v1  ;;  %v918_v23 = vsel %vm906_vm6, %v896_v34, %v899_v4 }
 0x145   : > { %2529 = vsinq.f32 %v1170_v26  ;;  %vm2324_vm10 = vcmp.lt.s32.totalorder %v2323_v62, 0  ;;  %v917_v29 = vsel %vm907_vm7, %v914_v2, %v916_v54  ;;  %v919_v3 = vsel %vm909_vm9, %v905_v20, 1326507024 }
 0x146   : > { %v1257_v6 = vsel %vm2324_vm10, 0, %v2323_v62  ;;  %v912_v51 = vsel %vm908_vm8, %v896_v34, %v911_v15  ;;  %v920_v58 = vsel %vm908_vm8, %v902_v12, %v919_v3  ;;  %vm3350_vm11 = vcmp.le.f32.partialorder %v1186_v22, 0.7853982 }
 0x147   : > { %v1258_v14 = vsub.s32 32, %v1257_v6  ;;  %v1262_v60 = vsub.s32 4294967266, %v1257_v6  ;;  %v1259_v36 = vshll.u32 %v3305_v28, %v1257_v6  ;;  %v921_v49 = vsel %vm907_vm7, %v918_v23, %v920_v58 }
 0x148   : > { %v3340_v41 = vmul.u32.u64.low %v3308_v52, %v917_v29  ;;  %v3341_v56 = vmul.u32.u64.high %v3308_v52, %v917_v29, %v3340_v41  ;;  %v3345_v47 = vmul.u32.u64.low %v3308_v52, %v921_v49  ;;  %v3346_v16 = vmul.u32.u64.high %v3308_v52, %v921_v49, %v3345_v47 }
 0x149   : > { %v1260_v63 = vshrl.u32 %v1242_v30, %v1258_v14  ;;  %v1263_v8 = vadd.s32 127, %v1262_v60  ;;  %v913_v28 = vsel %vm907_vm7, %v910_v17, %v912_v51  ;;  %v982_v9 = vshrl.u32 %v981_v13, 23 }
 0x14a   : > { %v1275_v42 = vsel %vm3350_vm11, 0, %v1273_v61  ;;  %v932_v30 = vadd.s32 1, %v3341_v56  ;;  %v985_v4 = vand.u32 8388607, %v978_v18  ;;  %vm1178_vm12 = vcmp.eq.s32.totalorder %v3301_v59, 0 }
 0x14b   : > { %v1261_v53 = vor.u32 %v1260_v63, %v1259_v36  ;;  %v1264_v34 = vshll.u32 %v1263_v8, 23  ;;  %v2313_v32 = vadd.s32 4294967169, %v982_v9  ;;  %v929_v12 = vmul.u32 %v3308_v52, %v913_v28 }
 0x14c   : > { %vm931_vm13 = vc.u32 %v3346_v16, %v3340_v41  ;;  %vm1181_vm14 = vcmp.eq.s32.totalorder %v3301_v59, 2  ;;  %v1279_v11 = vadd.s32 3, %v1275_v42  ;;  %v986_v2 = vor.u32 8388608, %v985_v4 }
 0x14d   : > { %v1265_v22 = vor.u32 4788187, %v1264_v34  ;;  %v933_v61 = vsel %vm931_vm13, %v932_v30, %v3341_v56  ;;  %v988_v33 = vadd.s32 1, %v2313_v32  ;;  %v1268_v26 = vcvt.s32.f32 %v1261_v53 }
 0x14e   : > { %v2528_v10 = vpop.eup %2527  ;;  %v934_v62 = vadd.s32 %v933_v61, %v929_v12  ;;  %v3370_v52 = vadd.f32 %v3364_v55, %v2801_v37  ;;  %vm1174_vm0 = vweird.f32 %v3101_v57  ;;  %vm1177_vm1 = vcmp.lt.s32.totalorder %v3301_v59, 2 }
 0x14f   : > { %v2530_v13 = vpop.eup %2529  ;;  %v1182_v5 = vxor.u32 2147483648, %v2528_v10  ;;  %v1266_v20 = vand.u32 2147483647, %v1265_v22  ;;  %vm989_vm15 = vcmp.gt.s32.totalorder %v988_v33, 0  ;;  %vm876_vm2 = vcmp.lt.s32.totalorder %v3254_v7, 0 }
 0x150   : > { %v1179_v15 = vxor.u32 2147483648, %v2530_v13  ;;  %v935_v54 = vadd.s32 536870912, %v934_v62  ;;  %v990_v6 = vsel %vm989_vm15, %v988_v33, 0  ;;  %v3377_v51 = vand.u32 3, %v1279_v11 }
 0x151   : > { %v1183_v1 = vsel %vm1181_vm14, %v1182_v5, %v2530_v13  ;;  %v1269_v17 = vmul.f32 %v1268_v26, %v1266_v20  ;;  %v992_v23 = vand.u32 31, %v990_v6  ;;  %v3379_v36 = vshll.u32 %v986_v2, 8 }
 0x152   : > { %v1180_v29 = vsel %vm1178_vm12, %v2528_v10, %v1179_v15  ;;  %v936_v60 = vshrl.u32 %v935_v54, 30  ;;  %v1501_v56 = vand.u32 2139095040, %v3370_v52  ;;  %v991_v30 = vshrl.u32 %v990_v6, 5 }
 0x153   : > { %v1184_v3 = vsel %vm1177_vm1, %v1180_v29, %v1183_v1  ;;  %v1270_v14 = vxor.u32 2147483648, %v1269_v17  ;;  %v993_v58 = vsub.s32 32, %v992_v23  ;;  %v995_v59 = vshll.u32 %v2672_v21, %v992_v23 }
 0x154   : > { %v1185_v37 = vsel %vm1174_vm0, nan, %v1184_v3  ;;  %v937_v49 = vshll.u32 %v936_v60, 30  ;;  %v998_v47 = vshll.u32 %v2673_v25, %v992_v23  ;;  %v1001_v53 = vshll.u32 %v2674_v27, %v992_v23 }
 0x155   : > { %v1271_v57 = vsel %vm1188_vm5, %v1270_v14, %v1269_v17  ;;  %2128 = vst [vmem:[%s3125_s23 + $0x30] sm:$0xff] %v1185_v37  ;;  %v996_v8 = vshrl.u32 %v2673_v25, %v993_v58  ;;  %v999_v28 = vshrl.u32 %v2674_v27, %v993_v58  ;;  %v1002_v34 = vshrl.u32 %v2675_v31, %v993_v58 }
 0x156   : > { %v1274_v63 = vsel %vm3350_vm11, %v3137_v0, %v1271_v57  ;;  %v3392_v9 = vsub.s32 %v934_v62, %v937_v49  ;;  %v960_v42 = vsub.s32 4, %v936_v60  ;;  %v1498_v32 = vand.u32 2147483647, %v3370_v52 }
 0x157   : > { %2531 = vcosq.f32 %v1274_v63  ;;  %v997_v4 = vor.u32 %v996_v8, %v995_v59  ;;  %v1000_v22 = vor.u32 %v999_v28, %v998_v47  ;;  %v1003_v12 = vor.u32 %v1002_v34, %v1001_v53 }
 0x158   : > { %2533 = vsinq.f32 %v1274_v63  ;;  %v940_v24 = vsub.s32 0, %v3392_v9  ;;  %v1004_v10 = vshll.u32 %v2675_v31, %v992_v23  ;;  %v1005_v11 = vshrl.u32 %v2676_v35, %v993_v58 }
 0x159   : > { %v1007_v61 = vshll.u32 %v2676_v35, %v992_v23  ;;  %v1008_v33 = vshrl.u32 %v2677_v50, %v993_v58  ;;  %vm1285_vm3 = vcmp.eq.s32.totalorder %v3377_v51, 2  ;;  %vm3405_vm4 = vcmp.le.f32.partialorder %v874_v48, 0.7853982 }
 0x15a   : > { %v930_v5 = vadd.s32 %v3340_v41, %v3346_v16  ;;  %v2310_v20 = vmin.u32 %v940_v24, %v3392_v9  ;;  %v994_v26 = vshrl.u32 %v2672_v21, %v993_v58  ;;  %v1502_v62 = vshrl.u32 %v1501_v56, 23 }
 0x15b   : > { %vm1282_vm5 = vcmp.eq.s32.totalorder %v3377_v51, 0  ;;  %v961_v15 = vsel %vm876_vm2, %v960_v42, %v936_v60  ;;  %v1006_v2 = vor.u32 %v1005_v11, %v1004_v10  ;;  %v1009_v1 = vor.u32 %v1008_v33, %v1007_v61 }
 0x15c   : > { %vm1010_vm6 = vcmp.lt.s32.totalorder %v991_v30, 1  ;;  %vm1281_vm7 = vcmp.lt.s32.totalorder %v3377_v51, 2  ;;  %v942_v48 = vclz %v2310_v20  ;;  %vm1011_vm8 = vcmp.lt.s32.totalorder %v991_v30, 2 }
 0x15d   : > { %vm1012_vm9 = vcmp.lt.s32.totalorder %v991_v30, 3  ;;  %vm1013_vm10 = vcmp.lt.s32.totalorder %v991_v30, 4  ;;  %vm1278_vm11 = vweird.f32 %v3137_v0  ;;  %v1018_v16 = vsel %vm1010_vm6, %v997_v4, %v1000_v22 }
 0x15e   : > { %v1015_v41 = vsel %vm1013_vm10, %v1003_v12, 2102212464  ;;  %v1019_v17 = vsel %vm1013_vm10, %v1006_v2, 920167782  ;;  %v1022_v54 = vsel %vm1010_vm6, %v1000_v22, %v1003_v12  ;;  %v2311_v6 = vadd.s32 4294967294, %v942_v48 }
 0x15f   : > { %v1014_v29 = vsel %vm1010_vm6, %v994_v26, %v997_v4  ;;  %v1020_v23 = vsel %vm1012_vm9, %v1003_v12, %v1019_v17  ;;  %v1023_v3 = vsel %vm1013_vm10, %v1009_v1, 1326507024  ;;  %v1016_v14 = vsel %vm1012_vm9, %v1000_v22, %v1015_v41  ;;  %v3449_v17 = vpop.permute.xlu0 %424 }
 0x160   : > { %v1021_v60 = vsel %vm1011_vm8, %v1018_v16, %v1020_v23  ;;  %v1024_v37 = vsel %vm1012_vm9, %v1006_v2, %v1023_v3  ;;  %v2333_v58 = vadd.s32 4294967169, %v1502_v62  ;;  %vm2312_vm12 = vcmp.lt.s32.totalorder %v2311_v6, 0 }
 0x161   : > { %v2532_v57 = vpop.eup %2531  ;;  %v1025_v49 = vsel %vm1011_vm8, %v1022_v54, %v1024_v37  ;;  %v3421_v59 = vmul.u32.u64.low %v3379_v36, %v1021_v60  ;;  %v3422_v56 = vmul.u32.u64.high %v3379_v36, %v1021_v60, %v3421_v59  ;;  %v945_v47 = vsel %vm2312_vm12, 0, %v2311_v6 }
 0x162   : > { %v2534_v63 = vpop.eup %2533  ;;  %v1286_v8 = vxor.u32 2147483648, %v2532_v57  ;;  %v3426_v28 = vmul.u32.u64.low %v3379_v36, %v1025_v49  ;;  %v3427_v53 = vmul.u32.u64.high %v3379_v36, %v1025_v49, %v3426_v28  ;;  %v946_v42 = vsub.s32 32, %v945_v47 }
 0x163   : > { %v1283_v34 = vxor.u32 2147483648, %v2534_v63  ;;  %v950_v24 = vsub.s32 4294967266, %v945_v47  ;;  %v1017_v4 = vsel %vm1011_vm8, %v1014_v29, %v1016_v14  ;;  %v947_v12 = vshll.u32 %v3392_v9, %v945_v47 }
 0x164   : > { %v1287_v22 = vsel %vm1285_vm3, %v1286_v8, %v2534_v63  ;;  %v963_v10 = vsel %vm3405_vm4, 0, %v961_v15  ;;  %v1508_v11 = vadd.s32 1, %v2333_v58  ;;  %v948_v33 = vshrl.u32 %v930_v5, %v946_v42 }
 0x165   : > { %v1284_v61 = vsel %vm1282_vm5, %v2532_v57, %v1283_v34  ;;  %v951_v20 = vadd.s32 127, %v950_v24  ;;  %v1036_v26 = vadd.s32 1, %v3422_v56  ;;  %v1033_v62 = vmul.u32 %v3379_v36, %v1017_v4 }
 0x166   : > { %v1288_v30 = vsel %vm1281_vm7, %v1284_v61, %v1287_v22  ;;  %vm1035_vm13 = vc.u32 %v3427_v53, %v3421_v59  ;;  %vm1509_vm14 = vcmp.gt.s32.totalorder %v1508_v11, 0  ;;  %v949_v15 = vor.u32 %v948_v33, %v947_v12 }
 0x167   : > { %v1289_v9 = vsel %vm1278_vm11, nan, %v1288_v30  ;;  %v952_v2 = vshll.u32 %v951_v20, 23  ;;  %v1037_v1 = vsel %vm1035_vm13, %v1036_v26, %v3422_v56  ;;  %v967_v5 = vadd.s32 3, %v963_v10 }
 0x168   : > { %2129 = vst [vmem:[%s3125_s23 + $0x38] sm:$0xff] %v1289_v9  ;;  %v1038_v48 = vadd.s32 %v1037_v1, %v1033_v62  ;;  %v1505_v51 = vand.u32 8388607, %v1498_v32  ;;  %v1510_v41 = vsel %vm1509_vm14, %v1508_v11, 0  ;;  %v956_v29 = vcvt.s32.f32 %v949_v15 }
 0x169   : > { %v953_v16 = vor.u32 4788187, %v952_v2  ;;  %v1512_v36 = vand.u32 31, %v1510_v41  ;;  %v3453_v0 = vadd.f32 %v3364_v55, %v2803_v38  ;;  %v3455_v3 = vand.u32 3, %v967_v5 }
 0x16a   : > { %v1039_v54 = vadd.s32 536870912, %v1038_v48  ;;  %v1506_v60 = vor.u32 8388608, %v1505_v51  ;;  %v3461_v37 = vadd.f32 %v3449_v17, %v2805_v39  ;;  %v1511_v24 = vshrl.u32 %v1510_v41, 5 }
 0x16b   : > { %v954_v6 = vand.u32 2147483647, %v953_v16  ;;  %v1513_v23 = vsub.s32 32, %v1512_v36  ;;  %v1515_v57 = vshll.u32 %v2672_v21, %v1512_v36  ;;  %v1518_v55 = vshll.u32 %v2673_v25, %v1512_v36 }
 0x16c   : > { %v3457_v14 = vshrl.u32 %v1039_v54, 30  ;;  %v1521_v28 = vshll.u32 %v2674_v27, %v1512_v36  ;;  %v1524_v39 = vshll.u32 %v2675_v31, %v1512_v36  ;;  %v1527_v22 = vshll.u32 %v2676_v35, %v1512_v36 }
 0x16d   : > { %v957_v58 = vmul.f32 %v956_v29, %v954_v6  ;;  %v1516_v49 = vshrl.u32 %v2673_v25, %v1513_v23  ;;  %v1519_v56 = vshrl.u32 %v2674_v27, %v1513_v23  ;;  %v1522_v63 = vshrl.u32 %v2675_v31, %v1513_v23 }
 0x16e   : > { %v1041_v38 = vshll.u32 %v3457_v14, 30  ;;  %v1525_v8 = vshrl.u32 %v2676_v35, %v1513_v23  ;;  %v1528_v34 = vshrl.u32 %v2677_v50, %v1513_v23  ;;  %v3482_v26 = vshll.u32 %v1506_v60, 8 }
 0x16f   : > { %v958_v47 = vxor.u32 2147483648, %v957_v58  ;;  %v1517_v4 = vor.u32 %v1516_v49, %v1515_v57  ;;  %v1520_v10 = vor.u32 %v1519_v56, %v1518_v55  ;;  %v1523_v11 = vor.u32 %v1522_v63, %v1521_v28 }
 0x170   : > { %v3473_v42 = vsub.s32 %v1038_v48, %v1041_v38  ;;  %v1526_v61 = vor.u32 %v1525_v8, %v1524_v39  ;;  %v1602_v30 = vand.u32 2147483647, %v3453_v0  ;;  %v1514_v62 = vshrl.u32 %v2672_v21, %v1513_v23 }
 0x171   : > { %v959_v12 = vsel %vm876_vm2, %v958_v47, %v957_v58  ;;  %v1529_v9 = vor.u32 %v1528_v34, %v1527_v22  ;;  %v1605_v15 = vand.u32 2139095040, %v3453_v0  ;;  %vm980_vm15 = vcmp.lt.s32.totalorder %v3296_v19, 0 }
 0x172   : > { %v962_v33 = vsel %vm3405_vm4, %v3254_v7, %v959_v12  ;;  %v1044_v20 = vsub.s32 0, %v3473_v42  ;;  %vm1530_vm0 = vcmp.lt.s32.totalorder %v1511_v24, 1  ;;  %vm1533_vm1 = vcmp.lt.s32.totalorder %v1511_v24, 4 }
 0x173   : > { %2535 = vcosq.f32 %v962_v33  ;;  %v1064_v13 = vsub.s32 4, %v3457_v14  ;;  %v1535_v1 = vsel %vm1533_vm1, %v1523_v11, 2102212464  ;;  %v1538_v5 = vsel %vm1530_vm0, %v1517_v4, %v1520_v10 }
 0x174   : > { %2537 = vsinq.f32 %v962_v33  ;;  %v2314_v2 = vmin.u32 %v1044_v20, %v3473_v42  ;;  %v1539_v48 = vsel %vm1533_vm1, %v1526_v61, 920167782  ;;  %vm1531_vm2 = vcmp.lt.s32.totalorder %v1511_v24, 2 }
 0x175   : > { %vm1532_vm3 = vcmp.lt.s32.totalorder %v1511_v24, 3  ;;  %v1542_v41 = vsel %vm1530_vm0, %v1520_v10, %v1523_v11  ;;  %v1534_v16 = vsel %vm1530_vm0, %v1514_v62, %v1517_v4  ;;  %v1543_v54 = vsel %vm1533_vm1, %v1529_v9, 1326507024 }
 0x176   : > { %v1046_v51 = vclz %v2314_v2  ;;  %v1540_v36 = vsel %vm1532_vm3, %v1523_v11, %v1539_v48  ;;  %v1606_v6 = vshrl.u32 %v1605_v15, 23  ;;  %vm3492_vm4 = vcmp.le.f32.partialorder %v978_v18, 0.7853982 }
 0x177   : > { %v1536_v60 = vsel %vm1532_vm3, %v1520_v10, %v1535_v1  ;;  %v1541_v58 = vsel %vm1531_vm2, %v1538_v5, %v1540_v36  ;;  %v1544_v57 = vsel %vm1532_vm3, %v1526_v61, %v1543_v54  ;;  %vm969_vm5 = vcmp.lt.s32.totalorder %v3455_v3, 2 }
 0x178   : > { %v2315_v23 = vadd.s32 4294967294, %v1046_v51  ;;  %v1545_v49 = vsel %vm1531_vm2, %v1542_v41, %v1544_v57  ;;  %v3499_v56 = vmul.u32.u64.low %v3482_v26, %v1541_v58  ;;  %v3500_v38 = vmul.u32.u64.high %v3482_v26, %v1541_v58, %v3499_v56 }
 0x179   : > { %v2337_v55 = vadd.s32 4294967169, %v1606_v6  ;;  %v3505_v18 = vmul.u32.u64.low %v3482_v26, %v1545_v49  ;;  %v3506_v63 = vmul.u32.u64.high %v3482_v26, %v1545_v49, %v3505_v18  ;;  %vm970_vm7 = vcmp.eq.s32.totalorder %v3455_v3, 0 }
 0x17a   : > { %vm2316_vm6 = vcmp.lt.s32.totalorder %v2315_v23, 0  ;;  %vm973_vm8 = vcmp.eq.s32.totalorder %v3455_v3, 2  ;;  %v1034_v28 = vadd.s32 %v3421_v59, %v3427_v53  ;;  %v1537_v4 = vsel %vm1531_vm2, %v1534_v16, %v1536_v60 }
 0x17b   : > { %v1049_v8 = vsel %vm2316_vm6, 0, %v2315_v23  ;;  %v1612_v47 = vadd.s32 1, %v2337_v55  ;;  %v1065_v12 = vsel %vm980_vm15, %v1064_v13, %v3457_v14  ;;  %v1556_v10 = vadd.s32 1, %v3500_v38 }
 0x17c   : > { %v1050_v39 = vsub.s32 32, %v1049_v8  ;;  %v1054_v34 = vsub.s32 4294967266, %v1049_v8  ;;  %v1609_v11 = vand.u32 8388607, %v1602_v30  ;;  %v1051_v20 = vshll.u32 %v3473_v42, %v1049_v8 }
 0x17d   : > { %v2536_v22 = vpop.eup %2535  ;;  %vm1613_vm9 = vcmp.gt.s32.totalorder %v1612_v47, 0  ;;  %v1553_v24 = vmul.u32 %v3482_v26, %v1537_v4  ;;  %vm1555_vm10 = vc.u32 %v3506_v63, %v3499_v56  ;;  %v1067_v1 = vsel %vm3492_vm4, 0, %v1065_v12 }
 0x17e   : > { %v2538_v61 = vpop.eup %2537  ;;  %v974_v33 = vxor.u32 2147483648, %v2536_v22  ;;  %v1052_v59 = vshrl.u32 %v1034_v28, %v1050_v39  ;;  %v1055_v53 = vadd.s32 127, %v1054_v34  ;;  %v1614_v9 = vsel %vm1613_vm9, %v1612_v47, 0 }
 0x17f   : > { %v971_v62 = vxor.u32 2147483648, %v2538_v61  ;;  %v1557_v13 = vsel %vm1555_vm10, %v1556_v10, %v3500_v38  ;;  %v1616_v26 = vand.u32 31, %v1614_v9  ;;  %vm966_vm11 = vweird.f32 %v3254_v7 }
 0x180   : > { %v975_v14 = vsel %vm973_vm8, %v974_v33, %v2538_v61  ;;  %v1053_v15 = vor.u32 %v1052_v59, %v1051_v20  ;;  %v1056_v2 = vshll.u32 %v1055_v53, 23  ;;  %v1558_v5 = vadd.s32 %v1557_v13, %v1553_v24 }
 0x181   : > { %v972_v42 = vsel %vm970_vm7, %v2536_v22, %v971_v62  ;;  %v1617_v36 = vsub.s32 32, %v1616_v26  ;;  %v1071_v23 = vadd.s32 3, %v1067_v1  ;;  %v1610_v60 = vor.u32 8388608, %v1609_v11 }
 0x182   : > { %v976_v48 = vsel %vm969_vm5, %v972_v42, %v975_v14  ;;  %v1057_v51 = vor.u32 4788187, %v1056_v2  ;;  %v1559_v16 = vadd.s32 536870912, %v1558_v5  ;;  %v1060_v6 = vcvt.s32.f32 %v1053_v15 }
 0x183   : > { %v977_v41 = vsel %vm966_vm11, nan, %v976_v48  ;;  %v1615_v57 = vshrl.u32 %v1614_v9, 5  ;;  %v1620_v49 = vshrl.u32 %v2673_v25, %v1617_v36  ;;  %v1293_v38 = vand.u32 2139095040, %v3461_v37 }
 0x184   : > { %v1058_v54 = vand.u32 2147483647, %v1057_v51  ;;  %2126 = vst [vmem:[%s3125_s23 + $0x20] sm:$0xff] %v977_v41  ;;  %v3534_v58 = vshrl.u32 %v1559_v16, 30  ;;  %v1623_v3 = vshrl.u32 %v2674_v27, %v1617_v36  ;;  %v1626_v55 = vshrl.u32 %v2675_v31, %v1617_v36 }
 0x185   : > { %v1629_v18 = vshrl.u32 %v2676_v35, %v1617_v36  ;;  %v1619_v47 = vshll.u32 %v2672_v21, %v1616_v26  ;;  %v1622_v28 = vshll.u32 %v2673_v25, %v1616_v26  ;;  %v1625_v39 = vshll.u32 %v2674_v27, %v1616_v26 }
 0x186   : > { %v1061_v7 = vmul.f32 %v1060_v6, %v1058_v54  ;;  %v1561_v8 = vshll.u32 %v3534_v58, 30  ;;  %v1628_v4 = vshll.u32 %v2675_v31, %v1616_v26  ;;  %v1631_v22 = vshll.u32 %v2676_v35, %v1616_v26 }
 0x187   : > { %v1632_v12 = vshrl.u32 %v2677_v50, %v1617_v36  ;;  %v1621_v11 = vor.u32 %v1620_v49, %v1619_v47  ;;  %v1627_v61 = vor.u32 %v1626_v55, %v1625_v39  ;;  %v1624_v20 = vor.u32 %v1623_v3, %v1622_v28 }
 0x188   : > { %v1062_v34 = vxor.u32 2147483648, %v1061_v7  ;;  %v3548_v10 = vsub.s32 %v1558_v5, %v1561_v8  ;;  %v1630_v59 = vor.u32 %v1629_v18, %v1628_v4  ;;  %v3555_v24 = vand.u32 3, %v1071_v23 }
 0x189   : > { %v1633_v53 = vor.u32 %v1632_v12, %v1631_v22  ;;  %v1650_v14 = vshll.u32 %v1610_v60, 8  ;;  %vm1500_vm12 = vcmp.lt.s32.totalorder %v3370_v52, 0  ;;  %v1618_v15 = vshrl.u32 %v2672_v21, %v1617_v36 }
 0x18a   : > { %v1063_v33 = vsel %vm980_vm15, %v1062_v34, %v1061_v7  ;;  %v1564_v9 = vsub.s32 0, %v3548_v10  ;;  %vm1637_vm13 = vcmp.lt.s32.totalorder %v1615_v57, 4  ;;  %v1294_v2 = vshrl.u32 %v1293_v38, 23 }
 0x18b   : > { %v1066_v62 = vsel %vm3492_vm4, %v3296_v19, %v1063_v33  ;;  %vm1634_vm14 = vcmp.lt.s32.totalorder %v1615_v57, 1  ;;  %v1639_v42 = vsel %vm1637_vm13, %v1627_v61, 2102212464  ;;  %v1643_v29 = vsel %vm1637_vm13, %v1630_v59, 920167782 }
 0x18c   : > { %2539 = vcosq.f32 %v1066_v62  ;;  %v2334_v13 = vmin.u32 %v1564_v9, %v3548_v10  ;;  %v1642_v1 = vsel %vm1634_vm14, %v1621_v11, %v1624_v20  ;;  %v1646_v5 = vsel %vm1634_vm14, %v1624_v20, %v1627_v61 }
 0x18d   : > { %2541 = vsinq.f32 %v1066_v62  ;;  %v1647_v26 = vsel %vm1637_vm13, %v1633_v53, 1326507024  ;;  %vm3563_vm15 = vcmp.le.f32.partialorder %v1498_v32, 0.7853982  ;;  %vm1635_vm0 = vcmp.lt.s32.totalorder %v1615_v57, 2 }
 0x18e   : > { %v1566_v51 = vclz %v2334_v13  ;;  %vm1636_vm1 = vcmp.lt.s32.totalorder %v1615_v57, 3  ;;  %v1638_v41 = vsel %vm1634_vm14, %v1618_v15, %v1621_v11  ;;  %v2325_v6 = vadd.s32 4294967169, %v1294_v2 }
 0x18f   : > { %v1640_v16 = vsel %vm1636_vm1, %v1624_v20, %v1639_v42  ;;  %v1644_v36 = vsel %vm1636_vm1, %v1627_v61, %v1643_v29  ;;  %v1648_v54 = vsel %vm1636_vm1, %v1630_v59, %v1647_v26  ;;  %v1584_v60 = vsub.s32 4, %v3534_v58 }
 0x190   : > { %v2335_v23 = vadd.s32 4294967294, %v1566_v51  ;;  %v1645_v49 = vsel %vm1635_vm0, %v1642_v1, %v1644_v36  ;;  %v1649_v38 = vsel %vm1635_vm0, %v1646_v5, %v1648_v54  ;;  %vm1074_vm2 = vcmp.eq.s32.totalorder %v3555_v24, 0 }
 0x191   : > { %v3568_v7 = vmul.u32.u64.low %v1650_v14, %v1649_v38  ;;  %v3569_v3 = vmul.u32.u64.high %v1650_v14, %v1649_v38, %v3568_v7  ;;  %v3571_v32 = vmul.u32.u64.low %v1650_v14, %v1645_v49  ;;  %v3572_v55 = vmul.u32.u64.high %v1650_v14, %v1645_v49, %v3571_v32 }
 0x192   : > { %vm2336_vm3 = vcmp.lt.s32.totalorder %v2335_v23, 0  ;;  %v1641_v57 = vsel %vm1635_vm0, %v1638_v41, %v1640_v16  ;;  %v1300_v18 = vadd.s32 1, %v2325_v6  ;;  %vm1077_vm4 = vcmp.eq.s32.totalorder %v3555_v24, 2 }
 0x193   : > { %v1554_v8 = vadd.s32 %v3499_v56, %v3506_v63  ;;  %v1569_v47 = vsel %vm2336_vm3, 0, %v2335_v23  ;;  %v1290_v28 = vand.u32 2147483647, %v3461_v37  ;;  %v1585_v4 = vsel %vm1500_vm12, %v1584_v60, %v3534_v58 }
 0x194   : > { %v1570_v39 = vsub.s32 32, %v1569_v47  ;;  %v1574_v34 = vsub.s32 4294967266, %v1569_v47  ;;  %vm1301_vm5 = vcmp.gt.s32.totalorder %v1300_v18, 0  ;;  %v1657_v12 = vmul.u32 %v1650_v14, %v1641_v57 }
 0x195   : > { %vm1659_vm6 = vc.u32 %v3569_v3, %v3571_v32  ;;  %v1660_v11 = vadd.s32 1, %v3572_v55  ;;  %v1302_v61 = vsel %vm1301_vm5, %v1300_v18, 0  ;;  %v1571_v63 = vshll.u32 %v3548_v10, %v1569_v47 }
 0x196   : > { %v2540_v22 = vpop.eup %2539  ;;  %v1572_v20 = vshrl.u32 %v1554_v8, %v1570_v39  ;;  %v1575_v59 = vadd.s32 127, %v1574_v34  ;;  %v1587_v62 = vsel %vm3563_vm15, 0, %v1585_v4  ;;  %v1304_v9 = vand.u32 31, %v1302_v61 }
 0x197   : > { %v2542_v33 = vpop.eup %2541  ;;  %v1078_v56 = vxor.u32 2147483648, %v2540_v22  ;;  %v1661_v58 = vsel %vm1659_vm6, %v1660_v11, %v3572_v55  ;;  %vm1070_vm7 = vweird.f32 %v3296_v19  ;;  %vm1073_vm8 = vcmp.lt.s32.totalorder %v3555_v24, 2 }
 0x198   : > { %v1075_v53 = vxor.u32 2147483648, %v2542_v33  ;;  %v1573_v15 = vor.u32 %v1572_v20, %v1571_v63  ;;  %v1576_v2 = vshll.u32 %v1575_v59, 23  ;;  %v1662_v13 = vadd.s32 %v1661_v58, %v1657_v12 }
 0x199   : > { %v1079_v14 = vsel %vm1077_vm4, %v1078_v56, %v2542_v33  ;;  %v1305_v42 = vsub.s32 32, %v1304_v9  ;;  %v1591_v5 = vadd.s32 3, %v1587_v62  ;;  %v1297_v16 = vand.u32 8388607, %v1290_v28 }
 0x19a   : > { %v1076_v10 = vsel %vm1074_vm2, %v2540_v22, %v1075_v53  ;;  %v1577_v29 = vor.u32 4788187, %v1576_v2  ;;  %v1663_v26 = vadd.s32 536870912, %v1662_v13  ;;  %v1580_v41 = vcvt.s32.f32 %v1573_v15 }
 0x19b   : > { %v1080_v1 = vsel %vm1073_vm8, %v1076_v10, %v1079_v14  ;;  %v1308_v36 = vshrl.u32 %v2673_v25, %v1305_v42  ;;  %v1311_v6 = vshrl.u32 %v2674_v27, %v1305_v42  ;;  %v1314_v24 = vshrl.u32 %v2675_v31, %v1305_v42 }
 0x19c   : > { %v1081_v51 = vsel %vm1070_vm7, nan, %v1080_v1  ;;  %v1578_v54 = vand.u32 2147483647, %v1577_v29  ;;  %v3600_v19 = vshrl.u32 %v1663_v26, 30  ;;  %v1303_v23 = vshrl.u32 %v1302_v61, 5 }
 0x19d   : > { %2127 = vst [vmem:[%s3125_s23 + $0x28] sm:$0xff] %v1081_v51  ;;  %v1307_v60 = vshll.u32 %v2672_v21, %v1304_v9  ;;  %v1316_v49 = vshll.u32 %v2675_v31, %v1304_v9  ;;  %v1317_v38 = vshrl.u32 %v2676_v35, %v1305_v42  ;;  %v1310_v57 = vshll.u32 %v2673_v25, %v1304_v9 }
 0x19e   : > { %v1581_v7 = vmul.f32 %v1580_v41, %v1578_v54  ;;  %v1665_v55 = vshll.u32 %v3600_v19, 30  ;;  %v1313_v18 = vshll.u32 %v2674_v27, %v1304_v9  ;;  %v1320_v39 = vshrl.u32 %v2677_v50, %v1305_v42 }
 0x19f   : > { %v1309_v8 = vor.u32 %v1308_v36, %v1307_v60  ;;  %v1318_v47 = vor.u32 %v1317_v38, %v1316_v49  ;;  %v1312_v22 = vor.u32 %v1311_v6, %v1310_v57  ;;  %v3613_v11 = vand.u32 3, %v1591_v5 }
 0x1a0   : > { %v1582_v34 = vxor.u32 2147483648, %v1581_v7  ;;  %v3611_v4 = vsub.s32 %v1662_v13, %v1665_v55  ;;  %v1315_v12 = vor.u32 %v1314_v24, %v1313_v18  ;;  %v3617_v61 = vadd.f32 %v3449_v17, %v2807_v40 }
 0x1a1   : > { %v1298_v33 = vor.u32 8388608, %v1297_v16  ;;  %v1319_v56 = vshll.u32 %v2676_v35, %v1304_v9  ;;  %vm1322_vm9 = vcmp.lt.s32.totalorder %v1303_v23, 1  ;;  %vm1325_vm10 = vcmp.lt.s32.totalorder %v1303_v23, 4 }
 0x1a2   : > { %v1583_v63 = vsel %vm1500_vm12, %v1582_v34, %v1581_v7  ;;  %v1668_v20 = vsub.s32 0, %v3611_v4  ;;  %vm1324_vm11 = vcmp.lt.s32.totalorder %v1303_v23, 3  ;;  %v1331_v62 = vsel %vm1325_vm10, %v1318_v47, 920167782 }
 0x1a3   : > { %v1586_v59 = vsel %vm3563_vm15, %v3370_v52, %v1583_v63  ;;  %v1321_v53 = vor.u32 %v1320_v39, %v1319_v56  ;;  %v1327_v17 = vsel %vm1325_vm10, %v1315_v12, 2102212464  ;;  %v1330_v58 = vsel %vm1322_vm9, %v1309_v8, %v1312_v22 }
 0x1a4   : > { %2543 = vcosq.f32 %v1586_v59  ;;  %v2338_v40 = vmin.u32 %v1668_v20, %v3611_v4  ;;  %v1306_v9 = vshrl.u32 %v2672_v21, %v1305_v42  ;;  %v1332_v14 = vsel %vm1324_vm11, %v1315_v12, %v1331_v62 }
 0x1a5   : > { %2545 = vsinq.f32 %v1586_v59  ;;  %v1397_v15 = vand.u32 2139095040, %v3617_v61  ;;  %vm1323_vm12 = vcmp.lt.s32.totalorder %v1303_v23, 2  ;;  %v1334_v2 = vsel %vm1322_vm9, %v1312_v22, %v1315_v12 }
 0x1a6   : > { %v1670_v48 = vclz %v2338_v40  ;;  %v1338_v13 = vshll.u32 %v1298_v33, 8  ;;  %v1326_v10 = vsel %vm1322_vm9, %v1306_v9, %v1309_v8  ;;  %v1328_v1 = vsel %vm1324_vm11, %v1312_v22, %v1327_v17 }
 0x1a7   : > { %v1333_v29 = vsel %vm1323_vm12, %v1330_v58, %v1332_v14  ;;  %v1335_v5 = vsel %vm1325_vm10, %v1321_v53, 1326507024  ;;  %vm1604_vm13 = vcmp.lt.s32.totalorder %v3453_v0, 0  ;;  %v1688_v16 = vsub.s32 4, %v3600_v19  ;;  %v3671_v14 = vpop.permute.xlu1 %439 }
 0x1a8   : > { %v2339_v26 = vadd.s32 4294967294, %v1670_v48  ;;  %v1336_v51 = vsel %vm1324_vm11, %v1318_v47, %v1335_v5  ;;  %v3638_v42 = vmul.u32.u64.low %v1338_v13, %v1333_v29  ;;  %v3639_v41 = vmul.u32.u64.high %v1338_v13, %v1333_v29, %v3638_v42 }
 0x1a9   : > { %v1337_v36 = vsel %vm1323_vm12, %v1334_v2, %v1336_v51  ;;  %v1398_v54 = vshrl.u32 %v1397_v15, 23  ;;  %v1329_v6 = vsel %vm1323_vm12, %v1326_v10, %v1328_v1  ;;  %vm1593_vm15 = vcmp.lt.s32.totalorder %v3613_v11, 2 }
 0x1aa   : > { %vm2340_vm14 = vcmp.lt.s32.totalorder %v2339_v26, 0  ;;  %v3644_v24 = vmul.u32.u64.low %v1338_v13, %v1337_v36  ;;  %v3645_v60 = vmul.u32.u64.high %v1338_v13, %v1337_v36, %v3644_v24  ;;  %vm3650_vm0 = vcmp.le.f32.partialorder %v1602_v30, 0.7853982 }
 0x1ab   : > { %v1673_v49 = vsel %vm2340_vm14, 0, %v2339_v26  ;;  %v2329_v38 = vadd.s32 4294967169, %v1398_v54  ;;  %v1658_v7 = vadd.s32 %v3571_v32, %v3569_v3  ;;  %v1348_v18 = vadd.s32 1, %v3639_v41 }
 0x1ac   : > { %v1674_v55 = vsub.s32 32, %v1673_v49  ;;  %v1678_v57 = vsub.s32 4294967266, %v1673_v49  ;;  %v1689_v8 = vsel %vm1604_vm13, %v1688_v16, %v3600_v19  ;;  %v1345_v47 = vmul.u32 %v1338_v13, %v1329_v6 }
 0x1ad   : > { %v1394_v39 = vand.u32 2147483647, %v3617_v61  ;;  %v1404_v30 = vadd.s32 1, %v2329_v38  ;;  %v1675_v22 = vshll.u32 %v3611_v4, %v1673_v49  ;;  %vm1347_vm1 = vc.u32 %v3645_v60, %v3638_v42 }
 0x1ae   : > { %v2544_v34 = vpop.eup %2543  ;;  %v1676_v12 = vshrl.u32 %v1658_v7, %v1674_v55  ;;  %v1679_v33 = vadd.s32 127, %v1678_v57  ;;  %vm1597_vm2 = vcmp.eq.s32.totalorder %v3613_v11, 2  ;;  %v1349_v56 = vsel %vm1347_vm1, %v1348_v18, %v3639_v41 }
 0x1af   : > { %v2546_v3 = vpop.eup %2545  ;;  %v1598_v32 = vxor.u32 2147483648, %v2544_v34  ;;  %vm1405_vm3 = vcmp.gt.s32.totalorder %v1404_v30, 0  ;;  %v1350_v59 = vadd.s32 %v1349_v56, %v1345_v47  ;;  %vm1594_vm4 = vcmp.eq.s32.totalorder %v3613_v11, 0 }
 0x1b0   : > { %v1595_v19 = vxor.u32 2147483648, %v2546_v3  ;;  %v1677_v63 = vor.u32 %v1676_v12, %v1675_v22  ;;  %v1680_v20 = vshll.u32 %v1679_v33, 23  ;;  %v1691_v4 = vsel %vm3650_vm0, 0, %v1689_v8 }
 0x1b1   : > { %v1599_v53 = vsel %vm1597_vm2, %v1598_v32, %v2546_v3  ;;  %v1406_v62 = vsel %vm1405_vm3, %v1404_v30, 0  ;;  %v1351_v58 = vadd.s32 536870912, %v1350_v59  ;;  %v1401_v9 = vand.u32 8388607, %v1394_v39 }
 0x1b2   : > { %v1596_v40 = vsel %vm1594_vm4, %v2544_v34, %v1595_v19  ;;  %v1681_v17 = vor.u32 4788187, %v1680_v20  ;;  %vm1590_vm5 = vweird.f32 %v3370_v52  ;;  %v1408_v48 = vand.u32 31, %v1406_v62 }
 0x1b3   : > { %v1600_v15 = vsel %vm1593_vm15, %v1596_v40, %v1599_v53  ;;  %v1684_v10 = vcvt.s32.f32 %v1677_v63  ;;  %v3676_v1 = vshrl.u32 %v1351_v58, 30  ;;  %v1695_v29 = vadd.s32 3, %v1691_v4 }
 0x1b4   : > { %v1601_v2 = vsel %vm1590_vm5, nan, %v1600_v15  ;;  %v1682_v13 = vand.u32 2147483647, %v1681_v17  ;;  %v1409_v5 = vsub.s32 32, %v1408_v48  ;;  %v3681_v26 = vadd.f32 %v3671_v14, %v2809_v43 }
 0x1b5   : > { %2132 = vst [vmem:[%s3125_s23 + $0x50] sm:$0xff] %v1601_v2  ;;  %v1353_v41 = vshll.u32 %v3676_v1, 30  ;;  %v1402_v52 = vor.u32 8388608, %v1401_v9  ;;  %v1411_v11 = vshll.u32 %v2672_v21, %v1408_v48  ;;  %v1414_v36 = vshll.u32 %v2673_v25, %v1408_v48 }
 0x1b6   : > { %v1685_v51 = vmul.f32 %v1684_v10, %v1682_v13  ;;  %v1412_v16 = vshrl.u32 %v2673_v25, %v1409_v5  ;;  %v1415_v54 = vshrl.u32 %v2674_v27, %v1409_v5  ;;  %v1418_v6 = vshrl.u32 %v2675_v31, %v1409_v5 }
 0x1b7   : > { %v3689_v49 = vsub.s32 %v1350_v59, %v1353_v41  ;;  %v1417_v43 = vshll.u32 %v2674_v27, %v1408_v48  ;;  %v1421_v38 = vshrl.u32 %v2676_v35, %v1409_v5  ;;  %v1407_v7 = vshrl.u32 %v1406_v62, 5 }
 0x1b8   : > { %v1686_v24 = vxor.u32 2147483648, %v1685_v51  ;;  %v1413_v55 = vor.u32 %v1412_v16, %v1411_v11  ;;  %v1420_v57 = vshll.u32 %v2675_v31, %v1408_v48  ;;  %v1917_v18 = vand.u32 2139095040, %v3681_v26 }
 0x1b9   : > { %v1356_v47 = vsub.s32 0, %v3689_v49  ;;  %v1416_v30 = vor.u32 %v1415_v54, %v1414_v36  ;;  %v1419_v34 = vor.u32 %v1418_v6, %v1417_v43  ;;  %v1423_v33 = vshll.u32 %v2676_v35, %v1408_v48 }
 0x1ba   : > { %v1687_v8 = vsel %vm1604_vm13, %v1686_v24, %v1685_v51  ;;  %v1422_v12 = vor.u32 %v1421_v38, %v1420_v57  ;;  %v1424_v3 = vshrl.u32 %v2677_v50, %v1409_v5  ;;  %v3703_v32 = vand.u32 3, %v1695_v29 }
 0x1bb   : > { %v1690_v22 = vsel %vm3650_vm0, %v3453_v0, %v1687_v8  ;;  %v2326_v56 = vmin.u32 %v1356_v47, %v3689_v49  ;;  %v3706_v19 = vshll.u32 %v1402_v52, 8  ;;  %v1410_v63 = vshrl.u32 %v2672_v21, %v1409_v5 }
 0x1bc   : > { %2547 = vcosq.f32 %v1690_v22  ;;  %v1425_v20 = vor.u32 %v1424_v3, %v1423_v33  ;;  %v1918_v59 = vshrl.u32 %v1917_v18, 23  ;;  %vm1292_vm6 = vcmp.lt.s32.totalorder %v3461_v37, 0 }
 0x1bd   : > { %2549 = vsinq.f32 %v1690_v22  ;;  %v1358_v23 = vclz %v2326_v56  ;;  %vm1426_vm7 = vcmp.lt.s32.totalorder %v1407_v7, 1  ;;  %vm1427_vm8 = vcmp.lt.s32.totalorder %v1407_v7, 2 }
 0x1be   : > { %vm1429_vm9 = vcmp.lt.s32.totalorder %v1407_v7, 4  ;;  %vm1428_vm10 = vcmp.lt.s32.totalorder %v1407_v7, 3  ;;  %v1434_v4 = vsel %vm1426_vm7, %v1413_v55, %v1416_v30  ;;  %v1430_v17 = vsel %vm1426_vm7, %v1410_v63, %v1413_v55 }
 0x1bf   : > { %v1431_v53 = vsel %vm1429_vm9, %v1419_v34, 2102212464  ;;  %v1435_v62 = vsel %vm1429_vm9, %v1422_v12, 920167782  ;;  %v2327_v40 = vadd.s32 4294967294, %v1358_v23  ;;  %v1438_v9 = vsel %vm1426_vm7, %v1416_v30, %v1419_v34 }
 0x1c0   : > { %v1436_v58 = vsel %vm1428_vm10, %v1419_v34, %v1435_v62  ;;  %vm1698_vm11 = vcmp.eq.s32.totalorder %v3703_v32, 0  ;;  %vm3714_vm12 = vcmp.le.f32.partialorder %v1290_v28, 0.7853982  ;;  %v1432_v48 = vsel %vm1428_vm10, %v1416_v30, %v1431_v53 }
 0x1c1   : > { %v1437_v2 = vsel %vm1427_vm8, %v1434_v4, %v1436_v58  ;;  %v1439_v13 = vsel %vm1429_vm9, %v1425_v20, 1326507024  ;;  %v2349_v10 = vadd.s32 4294967169, %v1918_v59  ;;  %vm1697_vm13 = vcmp.lt.s32.totalorder %v3703_v32, 2 }
 0x1c2   : > { %vm2328_vm14 = vcmp.lt.s32.totalorder %v2327_v40, 0  ;;  %v1440_v29 = vsel %vm1428_vm10, %v1422_v12, %v1439_v13  ;;  %v3723_v5 = vmul.u32.u64.low %v3706_v19, %v1437_v2  ;;  %v3724_v51 = vmul.u32.u64.high %v3706_v19, %v1437_v2, %v3723_v5 }
 0x1c3   : > { %v1361_v28 = vsel %vm2328_vm14, 0, %v2327_v40  ;;  %v1376_v41 = vsub.s32 4, %v3676_v1  ;;  %v1441_v52 = vsel %vm1427_vm8, %v1438_v9, %v1440_v29  ;;  %v1924_v11 = vadd.s32 1, %v2349_v10 }
 0x1c4   : > { %v1346_v16 = vadd.s32 %v3638_v42, %v3645_v60  ;;  %v1362_v36 = vsub.s32 32, %v1361_v28  ;;  %v1366_v54 = vsub.s32 4294967266, %v1361_v28  ;;  %v1433_v6 = vsel %vm1427_vm8, %v1430_v17, %v1432_v48 }
 0x1c5   : > { %v1363_v24 = vshll.u32 %v3689_v49, %v1361_v28  ;;  %v3734_v43 = vmul.u32.u64.low %v3706_v19, %v1441_v52  ;;  %v3735_v38 = vmul.u32.u64.high %v3706_v19, %v1441_v52, %v3734_v43  ;;  %vm1925_vm15 = vcmp.gt.s32.totalorder %v1924_v11, 0 }
 0x1c6   : > { %v2548_v55 = vpop.eup %2547  ;;  %v1364_v57 = vshrl.u32 %v1346_v16, %v1362_v36  ;;  %v1367_v18 = vadd.s32 127, %v1366_v54  ;;  %v1452_v8 = vadd.s32 1, %v3724_v51  ;;  %v1926_v47 = vsel %vm1925_vm15, %v1924_v11, 0 }
 0x1c7   : > { %v2550_v30 = vpop.eup %2549  ;;  %vm1701_vm0 = vcmp.eq.s32.totalorder %v3703_v32, 2  ;;  %v1702_v42 = vxor.u32 2147483648, %v2548_v55  ;;  %v1377_v60 = vsel %vm1292_vm6, %v1376_v41, %v3676_v1  ;;  %v1928_v49 = vand.u32 31, %v1926_v47 }
 0x1c8   : > { %v1699_v7 = vxor.u32 2147483648, %v2550_v30  ;;  %v1365_v34 = vor.u32 %v1364_v57, %v1363_v24  ;;  %v1368_v22 = vshll.u32 %v1367_v18, 23  ;;  %v1914_v12 = vand.u32 2147483647, %v3681_v26 }
 0x1c9   : > { %v1703_v33 = vsel %vm1701_vm0, %v1702_v42, %v2550_v30  ;;  %v1449_v3 = vmul.u32 %v3706_v19, %v1433_v6  ;;  %vm1451_vm1 = vc.u32 %v3735_v38, %v3723_v5  ;;  %v1929_v56 = vsub.s32 32, %v1928_v49 }
 0x1ca   : > { %v1700_v63 = vsel %vm1698_vm11, %v2548_v55, %v1699_v7  ;;  %v1369_v20 = vor.u32 4788187, %v1368_v22  ;;  %v1379_v1 = vsel %vm3714_vm12, 0, %v1377_v60  ;;  %v1453_v59 = vsel %vm1451_vm1, %v1452_v8, %v3724_v51 }
 0x1cb   : > { %vm1694_vm2 = vweird.f32 %v3453_v0  ;;  %v1704_v23 = vsel %vm1697_vm13, %v1700_v63, %v1703_v33  ;;  %v1454_v53 = vadd.s32 %v1453_v59, %v1449_v3  ;;  %v3756_v19 = vadd.f32 %v3671_v14, %v2811_v44 }
 0x1cc   : > { %v1705_v4 = vsel %vm1694_vm2, nan, %v1704_v23  ;;  %v1370_v62 = vand.u32 2147483647, %v1369_v20  ;;  %v1372_v40 = vcvt.s32.f32 %v1365_v34  ;;  %v1921_v17 = vand.u32 8388607, %v1914_v12 }
 0x1cd   : > { %2133 = vst [vmem:[%s3125_s23 + $0x58] sm:$0xff] %v1705_v4  ;;  %v1383_v58 = vadd.s32 3, %v1379_v1  ;;  %v1455_v9 = vadd.s32 536870912, %v1454_v53  ;;  %v1932_v48 = vshrl.u32 %v2673_v25, %v1929_v56  ;;  %v1935_v0 = vshrl.u32 %v2674_v27, %v1929_v56 }
 0x1ce   : > { %v1373_v32 = vmul.f32 %v1372_v40, %v1370_v62  ;;  %v1927_v2 = vshrl.u32 %v1926_v47, 5  ;;  %v1938_v13 = vshrl.u32 %v2675_v31, %v1929_v56  ;;  %v1941_v44 = vshrl.u32 %v2676_v35, %v1929_v56 }
 0x1cf   : > { %v1456_v14 = vshrl.u32 %v1455_v9, 30  ;;  %v1931_v10 = vshll.u32 %v2672_v21, %v1928_v49  ;;  %v1934_v29 = vshll.u32 %v2673_v25, %v1928_v49  ;;  %v1937_v51 = vshll.u32 %v2674_v27, %v1928_v49 }
 0x1d0   : > { %v1374_v28 = vxor.u32 2147483648, %v1373_v32  ;;  %v1940_v41 = vshll.u32 %v2675_v31, %v1928_v49  ;;  %v1943_v52 = vshll.u32 %v2676_v35, %v1928_v49  ;;  %v1944_v11 = vshrl.u32 %v2677_v50, %v1929_v56 }
 0x1d1   : > { %v1457_v16 = vshll.u32 %v1456_v14, 30  ;;  %v1922_v36 = vor.u32 8388608, %v1921_v17  ;;  %v1933_v54 = vor.u32 %v1932_v48, %v1931_v10  ;;  %v1936_v6 = vor.u32 %v1935_v0, %v1934_v29 }
 0x1d2   : > { %v1375_v24 = vsel %vm1292_vm6, %v1374_v28, %v1373_v32  ;;  %v1939_v43 = vor.u32 %v1938_v13, %v1937_v51  ;;  %v1942_v55 = vor.u32 %v1941_v44, %v1940_v41  ;;  %v1945_v57 = vor.u32 %v1944_v11, %v1943_v52 }
 0x1d3   : > { %v1378_v18 = vsel %vm3714_vm12, %v3461_v37, %v1375_v24  ;;  %v3776_v8 = vand.u32 3, %v1383_v58  ;;  %v3778_v47 = vsub.s32 %v1454_v53, %v1457_v16  ;;  %v1930_v30 = vshrl.u32 %v2672_v21, %v1929_v56 }
 0x1d4   : > { %2551 = vcosq.f32 %v1378_v18  ;;  %v1480_v42 = vsub.s32 4, %v1456_v14  ;;  %vm1946_vm3 = vcmp.lt.s32.totalorder %v1927_v2, 1  ;;  %vm1948_vm4 = vcmp.lt.s32.totalorder %v1927_v2, 3 }
 0x1d5   : > { %2553 = vsinq.f32 %v1378_v18  ;;  %v1460_v60 = vsub.s32 0, %v3778_v47  ;;  %vm1949_vm5 = vcmp.lt.s32.totalorder %v1927_v2, 4  ;;  %v1954_v49 = vsel %vm1946_vm3, %v1933_v54, %v1936_v6  ;;  %v3825_v18 = vpop.permute.xlu0 %434 }
 0x1d6   : > { %v1951_v7 = vsel %vm1949_vm5, %v1939_v43, 2102212464  ;;  %v1955_v34 = vsel %vm1949_vm5, %v1942_v55, 920167782  ;;  %v1958_v15 = vsel %vm1946_vm3, %v1936_v6, %v1939_v43  ;;  %v1959_v22 = vsel %vm1949_vm5, %v1945_v57, 1326507024 }
 0x1d7   : > { %v2330_v33 = vmin.u32 %v1460_v60, %v3778_v47  ;;  %vm1947_vm6 = vcmp.lt.s32.totalorder %v1927_v2, 2  ;;  %v1956_v3 = vsel %vm1948_vm4, %v1939_v43, %v1955_v34  ;;  %v1960_v56 = vsel %vm1948_vm4, %v1942_v55, %v1959_v22 }
 0x1d8   : > { %v1957_v63 = vsel %vm1947_vm6, %v1954_v49, %v1956_v3  ;;  %v1961_v20 = vsel %vm1947_vm6, %v1958_v15, %v1960_v56  ;;  %v1962_v1 = vshll.u32 %v1922_v36, 8  ;;  %v2021_v59 = vand.u32 2139095040, %v3756_v19 }
 0x1d9   : > { %vm1396_vm7 = vcmp.lt.s32.totalorder %v3617_v61, 0  ;;  %v1462_v23 = vclz %v2330_v33  ;;  %v1950_v53 = vsel %vm1946_vm3, %v1930_v30, %v1933_v54  ;;  %v1952_v4 = vsel %vm1948_vm4, %v1936_v6, %v1951_v7 }
 0x1da   : > { %v3793_v62 = vmul.u32.u64.low %v1962_v1, %v1961_v20  ;;  %v3794_v40 = vmul.u32.u64.high %v1962_v1, %v1961_v20, %v3793_v62  ;;  %v3796_v17 = vmul.u32.u64.low %v1962_v1, %v1957_v63  ;;  %v3797_v58 = vmul.u32.u64.high %v1962_v1, %v1957_v63, %v3796_v17 }
 0x1db   : > { %v2331_v9 = vadd.s32 4294967294, %v1462_v23  ;;  %v1481_v48 = vsel %vm1396_vm7, %v1480_v42, %v1456_v14  ;;  %v2022_v0 = vshrl.u32 %v2021_v59, 23  ;;  %vm1386_vm8 = vcmp.eq.s32.totalorder %v3776_v8, 0 }
 0x1dc   : > { %vm1389_vm9 = vcmp.eq.s32.totalorder %v3776_v8, 2  ;;  %vm3805_vm10 = vcmp.le.f32.partialorder %v1394_v39, 0.7853982  ;;  %v1953_v13 = vsel %vm1947_vm6, %v1950_v53, %v1952_v4  ;;  %v1450_v44 = vadd.s32 %v3723_v5, %v3735_v38 }
 0x1dd   : > { %vm2332_vm11 = vcmp.lt.s32.totalorder %v2331_v9, 0  ;;  %v2018_v10 = vand.u32 2147483647, %v3756_v19  ;;  %v2353_v14 = vadd.s32 4294967169, %v2022_v0  ;;  %v1483_v28 = vsel %vm3805_vm10, 0, %v1481_v48 }
 0x1de   : > { %v2552_v29 = vpop.eup %2551  ;;  %v1465_v51 = vsel %vm2332_vm11, 0, %v2331_v9  ;;  %vm1971_vm12 = vc.u32 %v3794_v40, %v3796_v17  ;;  %v1972_v39 = vadd.s32 1, %v3797_v58  ;;  %v1969_v16 = vmul.u32 %v1962_v1, %v1953_v13 }
 0x1df   : > { %v2554_v41 = vpop.eup %2553  ;;  %v1390_v52 = vxor.u32 2147483648, %v2552_v29  ;;  %v1466_v2 = vsub.s32 32, %v1465_v51  ;;  %v1470_v11 = vsub.s32 4294967266, %v1465_v51  ;;  %v1467_v5 = vshll.u32 %v3778_v47, %v1465_v51 }
 0x1e0   : > { %v1387_v36 = vxor.u32 2147483648, %v2554_v41  ;;  %v1973_v38 = vsel %vm1971_vm12, %v1972_v39, %v3797_v58  ;;  %v2028_v54 = vadd.s32 1, %v2353_v14  ;;  %vm1382_vm13 = vweird.f32 %v3461_v37 }
 0x1e1   : > { %v1391_v6 = vsel %vm1389_vm9, %v1390_v52, %v2554_v41  ;;  %v1468_v24 = vshrl.u32 %v1450_v44, %v1466_v2  ;;  %v1471_v43 = vadd.s32 127, %v1470_v11  ;;  %v1974_v55 = vadd.s32 %v1973_v38, %v1969_v16 }
 0x1e2   : > { %vm1385_vm14 = vcmp.lt.s32.totalorder %v3776_v8, 2  ;;  %v1388_v57 = vsel %vm1386_vm8, %v2552_v29, %v1387_v36  ;;  %vm2029_vm15 = vcmp.gt.s32.totalorder %v2028_v54, 0  ;;  %v1487_v7 = vadd.s32 3, %v1483_v28 }
 0x1e3   : > { %v1392_v47 = vsel %vm1385_vm14, %v1388_v57, %v1391_v6  ;;  %v1469_v30 = vor.u32 %v1468_v24, %v1467_v5  ;;  %v1472_v42 = vshll.u32 %v1471_v43, 23  ;;  %v1975_v60 = vadd.s32 536870912, %v1974_v55 }
 0x1e4   : > { %v1393_v49 = vsel %vm1382_vm13, nan, %v1392_v47  ;;  %v2025_v34 = vand.u32 8388607, %v2018_v10  ;;  %v2030_v15 = vsel %vm2029_vm15, %v2028_v54, 0  ;;  %v3834_v8 = vadd.f32 %v3825_v18, %v2813_v45 }
 0x1e5   : > { %v1473_v22 = vor.u32 4788187, %v1472_v42  ;;  %2130 = vst [vmem:[%s3125_s23 + $0x40] sm:$0xff] %v1393_v49  ;;  %v3830_v37 = vshrl.u32 %v1975_v60, 30  ;;  %v2032_v33 = vand.u32 31, %v2030_v15  ;;  %v1476_v56 = vcvt.s32.f32 %v1469_v30 }
 0x1e6   : > { %v3837_v20 = vand.u32 3, %v1487_v7  ;;  %v2026_v1 = vor.u32 8388608, %v2025_v34  ;;  %v1970_v53 = vadd.s32 %v3796_v17, %v3794_v40  ;;  %v1709_v62 = vand.u32 2139095040, %v3834_v8 }
 0x1e7   : > { %v1474_v3 = vand.u32 2147483647, %v1473_v22  ;;  %v1977_v63 = vshll.u32 %v3830_v37, 30  ;;  %v2033_v59 = vsub.s32 32, %v2032_v33  ;;  %v2031_v58 = vshrl.u32 %v2030_v15, 5 }
 0x1e8   : > { %v2035_v45 = vshll.u32 %v2672_v21, %v2032_v33  ;;  %v2038_v44 = vshll.u32 %v2673_v25, %v2032_v33  ;;  %v2041_v40 = vshll.u32 %v2674_v27, %v2032_v33  ;;  %v2044_v17 = vshll.u32 %v2675_v31, %v2032_v33 }
 0x1e9   : > { %v1477_v23 = vmul.f32 %v1476_v56, %v1474_v3  ;;  %v3840_v4 = vsub.s32 %v1974_v55, %v1977_v63  ;;  %v2036_v9 = vshrl.u32 %v2673_v25, %v2033_v59  ;;  %v2039_v48 = vshrl.u32 %v2674_v27, %v2033_v59 }
 0x1ea   : > { %v2042_v14 = vshrl.u32 %v2675_v31, %v2033_v59  ;;  %v2045_v51 = vshrl.u32 %v2676_v35, %v2033_v59  ;;  %v2047_v52 = vshll.u32 %v2676_v35, %v2032_v33  ;;  %v2048_v36 = vshrl.u32 %v2677_v50, %v2033_v59 }
 0x1eb   : > { %v1478_v0 = vxor.u32 2147483648, %v1477_v23  ;;  %v1980_v13 = vsub.s32 0, %v3840_v4  ;;  %v2037_v29 = vor.u32 %v2036_v9, %v2035_v45  ;;  %v2040_v41 = vor.u32 %v2039_v48, %v2038_v44 }
 0x1ec   : > { %v2043_v11 = vor.u32 %v2042_v14, %v2041_v40  ;;  %v2046_v16 = vor.u32 %v2045_v51, %v2044_v17  ;;  %v3860_v38 = vshll.u32 %v2026_v1, 8  ;;  %v1710_v54 = vshrl.u32 %v1709_v62, 23 }
 0x1ed   : > { %v1479_v28 = vsel %vm1396_vm7, %v1478_v0, %v1477_v23  ;;  %v2350_v39 = vmin.u32 %v1980_v13, %v3840_v4  ;;  %vm1916_vm0 = vcmp.lt.s32.totalorder %v3681_v26, 0  ;;  %v2034_v6 = vshrl.u32 %v2672_v21, %v2033_v59 }
 0x1ee   : > { %v1482_v2 = vsel %vm3805_vm10, %v3617_v61, %v1479_v28  ;;  %v2049_v24 = vor.u32 %v2048_v36, %v2047_v52  ;;  %vm2050_vm1 = vcmp.lt.s32.totalorder %v2031_v58, 1  ;;  %vm2052_vm2 = vcmp.lt.s32.totalorder %v2031_v58, 3 }
 0x1ef   : > { %2555 = vcosq.f32 %v1482_v2  ;;  %v1982_v5 = vclz %v2350_v39  ;;  %vm2053_vm3 = vcmp.lt.s32.totalorder %v2031_v58, 4  ;;  %v2058_v32 = vsel %vm2050_vm1, %v2037_v29, %v2040_v41 }
 0x1f0   : > { %2557 = vsinq.f32 %v1482_v2  ;;  %v2055_v55 = vsel %vm2053_vm3, %v2043_v11, 2102212464  ;;  %v2059_v57 = vsel %vm2053_vm3, %v2046_v16, 920167782  ;;  %v2062_v47 = vsel %vm2050_vm1, %v2040_v41, %v2043_v11 }
 0x1f1   : > { %v2351_v43 = vadd.s32 4294967294, %v1982_v5  ;;  %v2063_v30 = vsel %vm2053_vm3, %v2049_v24, 1326507024  ;;  %vm3868_vm4 = vcmp.le.f32.partialorder %v1914_v12, 0.7853982  ;;  %vm2051_vm6 = vcmp.lt.s32.totalorder %v2031_v58, 2 }
 0x1f2   : > { %v2060_v60 = vsel %vm2052_vm2, %v2043_v11, %v2059_v57  ;;  %v2064_v49 = vsel %vm2052_vm2, %v2046_v16, %v2063_v30  ;;  %v2000_v34 = vsub.s32 4, %v3830_v37  ;;  %vm1489_vm7 = vcmp.lt.s32.totalorder %v3837_v20, 2 }
 0x1f3   : > { %vm2352_vm5 = vcmp.lt.s32.totalorder %v2351_v43, 0  ;;  %v2061_v15 = vsel %vm2051_vm6, %v2058_v32, %v2060_v60  ;;  %v2065_v22 = vsel %vm2051_vm6, %v2062_v47, %v2064_v49  ;;  %v2054_v3 = vsel %vm2050_vm1, %v2034_v6, %v2037_v29 }
 0x1f4   : > { %v1985_v7 = vsel %vm2352_vm5, 0, %v2351_v43  ;;  %v2056_v56 = vsel %vm2052_vm2, %v2040_v41, %v2055_v55  ;;  %v3881_v63 = vmul.u32.u64.low %v3860_v38, %v2065_v22  ;;  %v3882_v1 = vmul.u32.u64.high %v3860_v38, %v2065_v22, %v3881_v63 }
 0x1f5   : > { %v1986_v33 = vsub.s32 32, %v1985_v7  ;;  %v1990_v12 = vsub.s32 4294967266, %v1985_v7  ;;  %v3885_v59 = vmul.u32.u64.low %v3860_v38, %v2061_v15  ;;  %v3886_v23 = vmul.u32.u64.high %v3860_v38, %v2061_v15, %v3885_v59 }
 0x1f6   : > { %v1987_v62 = vshll.u32 %v3840_v4, %v1985_v7  ;;  %v2341_v48 = vadd.s32 4294967169, %v1710_v54  ;;  %vm1490_vm8 = vcmp.eq.s32.totalorder %v3837_v20, 0  ;;  %vm1493_vm9 = vcmp.eq.s32.totalorder %v3837_v20, 2 }
 0x1f7   : > { %v1988_v45 = vshrl.u32 %v1970_v53, %v1986_v33  ;;  %v1991_v9 = vadd.s32 127, %v1990_v12  ;;  %v2057_v0 = vsel %vm2051_vm6, %v2054_v3, %v2056_v56  ;;  %v3895_v13 = vadd.f32 %v3825_v18, %v2815_v46 }
 0x1f8   : > { %v2001_v4 = vsel %vm1916_vm0, %v2000_v34, %v3830_v37  ;;  %v1716_v53 = vadd.s32 1, %v2341_v48  ;;  %vm2075_vm10 = vc.u32 %v3882_v1, %v3885_v59  ;;  %v2076_v58 = vadd.s32 1, %v3886_v23 }
 0x1f9   : > { %v2556_v44 = vpop.eup %2555  ;;  %v1989_v14 = vor.u32 %v1988_v45, %v1987_v62  ;;  %v1992_v29 = vshll.u32 %v1991_v9, 23  ;;  %v1706_v51 = vand.u32 2147483647, %v3834_v8  ;;  %v2073_v18 = vmul.u32 %v3860_v38, %v2057_v0 }
 0x1fa   : > { %v2558_v40 = vpop.eup %2557  ;;  %v1494_v17 = vxor.u32 2147483648, %v2556_v44  ;;  %vm1717_vm11 = vcmp.gt.s32.totalorder %v1716_v53, 0  ;;  %v2003_v37 = vsel %vm3868_vm4, 0, %v2001_v4  ;;  %v2077_v41 = vsel %vm2075_vm10, %v2076_v58, %v3886_v23 }
 0x1fb   : > { %v1491_v28 = vxor.u32 2147483648, %v2558_v40  ;;  %v1993_v46 = vor.u32 4788187, %v1992_v29  ;;  %v1718_v52 = vsel %vm1717_vm11, %v1716_v53, 0  ;;  %v1996_v16 = vcvt.s32.f32 %v1989_v14 }
 0x1fc   : > { %v1495_v39 = vsel %vm1493_vm9, %v1494_v17, %v2558_v40  ;;  %v2078_v36 = vadd.s32 %v2077_v41, %v2073_v18  ;;  %vm1486_vm12 = vweird.f32 %v3617_v61  ;;  %v1720_v38 = vand.u32 31, %v1718_v52 }
 0x1fd   : > { %v1492_v2 = vsel %vm1490_vm8, %v2556_v44, %v1491_v28  ;;  %v1994_v11 = vand.u32 2147483647, %v1993_v46  ;;  %v1713_v43 = vand.u32 8388607, %v1706_v51  ;;  %v2007_v32 = vadd.s32 3, %v2003_v37 }
 0x1fe   : > { %v1496_v5 = vsel %vm1489_vm7, %v1492_v2, %v1495_v39  ;;  %v2079_v24 = vadd.s32 536870912, %v2078_v36  ;;  %v1719_v55 = vshrl.u32 %v1718_v52, 5  ;;  %v1721_v57 = vsub.s32 32, %v1720_v38 }
 0x1ff   : > { %v1497_v54 = vsel %vm1486_vm12, nan, %v1496_v5  ;;  %v1997_v6 = vmul.f32 %v1996_v16, %v1994_v11  ;;  %v1813_v47 = vand.u32 2139095040, %v3895_v13  ;;  %v1723_v61 = vshll.u32 %v2672_v21, %v1720_v38 }
 0x200   : > { %2131 = vst [vmem:[%s3125_s23 + $0x48] sm:$0xff] %v1497_v54  ;;  %v3919_v60 = vshrl.u32 %v2079_v24, 30  ;;  %v1726_v20 = vshll.u32 %v2673_v25, %v1720_v38  ;;  %v1724_v49 = vshrl.u32 %v2673_v25, %v1721_v57  ;;  %v1727_v7 = vshrl.u32 %v2674_v27, %v1721_v57 }
 0x201   : > { %v1998_v30 = vxor.u32 2147483648, %v1997_v6  ;;  %v1729_v34 = vshll.u32 %v2674_v27, %v1720_v38  ;;  %v1730_v15 = vshrl.u32 %v2675_v31, %v1721_v57  ;;  %v1732_v12 = vshll.u32 %v2675_v31, %v1720_v38 }
 0x202   : > { %v2081_v33 = vshll.u32 %v3919_v60, 30  ;;  %v1733_v3 = vshrl.u32 %v2676_v35, %v1721_v57  ;;  %v3935_v63 = vand.u32 3, %v2007_v32  ;;  %v1725_v23 = vor.u32 %v1724_v49, %v1723_v61 }
 0x203   : > { %v1999_v22 = vsel %vm1916_vm0, %v1998_v30, %v1997_v6  ;;  %v1731_v62 = vor.u32 %v1730_v15, %v1729_v34  ;;  %v1728_v9 = vor.u32 %v1727_v7, %v1726_v20  ;;  %v1714_v0 = vor.u32 8388608, %v1713_v43 }
 0x204   : > { %v2002_v56 = vsel %vm3868_vm4, %v3681_v26, %v1999_v22  ;;  %v3937_v45 = vsub.s32 %v2078_v36, %v2081_v33  ;;  %v1734_v48 = vor.u32 %v1733_v3, %v1732_v12  ;;  %v1735_v44 = vshll.u32 %v2676_v35, %v1720_v38 }
 0x205   : > { %2559 = vcosq.f32 %v2002_v56  ;;  %v1736_v14 = vshrl.u32 %v2677_v50, %v1721_v57  ;;  %vm1741_vm13 = vcmp.lt.s32.totalorder %v1719_v55, 4  ;;  %v1810_v42 = vand.u32 2147483647, %v3895_v13 }
 0x206   : > { %2561 = vsinq.f32 %v2002_v56  ;;  %v2084_v29 = vsub.s32 0, %v3937_v45  ;;  %v1814_v4 = vshrl.u32 %v1813_v47, 23  ;;  %v1722_v53 = vshrl.u32 %v2672_v21, %v1721_v57 }
 0x207   : > { %v1737_v40 = vor.u32 %v1736_v14, %v1735_v44  ;;  %vm1738_vm14 = vcmp.lt.s32.totalorder %v1719_v55, 1  ;;  %v1743_v17 = vsel %vm1741_vm13, %v1731_v62, 2102212464  ;;  %vm1740_vm15 = vcmp.lt.s32.totalorder %v1719_v55, 3 }
 0x208   : > { %v2354_v58 = vmin.u32 %v2084_v29, %v3937_v45  ;;  %v1746_v28 = vsel %vm1738_vm14, %v1725_v23, %v1728_v9  ;;  %v1747_v46 = vsel %vm1741_vm13, %v1734_v48, 920167782  ;;  %v1750_v39 = vsel %vm1738_vm14, %v1728_v9, %v1731_v62 }
 0x209   : > { %v1748_v18 = vsel %vm1740_vm15, %v1731_v62, %v1747_v46  ;;  %v1751_v37 = vsel %vm1741_vm13, %v1737_v40, 1326507024  ;;  %v1754_v41 = vshll.u32 %v1714_v0, 8  ;;  %vm2009_vm0 = vcmp.lt.s32.totalorder %v3935_v63, 2 }
 0x20a   : > { %v2086_v52 = vclz %v2354_v58  ;;  %vm1739_vm1 = vcmp.lt.s32.totalorder %v1719_v55, 2  ;;  %v1742_v2 = vsel %vm1738_vm14, %v1722_v53, %v1725_v23  ;;  %v1744_v11 = vsel %vm1740_vm15, %v1728_v9, %v1743_v17 }
 0x20b   : > { %vm2006_vm2 = vweird.f32 %v3681_v26  ;;  %vm2010_vm3 = vcmp.eq.s32.totalorder %v3935_v63, 0  ;;  %v1749_v16 = vsel %vm1739_vm1, %v1746_v28, %v1748_v18  ;;  %v1752_v36 = vsel %vm1740_vm15, %v1734_v48, %v1751_v37 }
 0x20c   : > { %v2345_v5 = vadd.s32 4294967169, %v1814_v4  ;;  %v2355_v38 = vadd.s32 4294967294, %v2086_v52  ;;  %v1753_v54 = vsel %vm1739_vm1, %v1750_v39, %v1752_v36  ;;  %v1745_v43 = vsel %vm1739_vm1, %v1742_v2, %v1744_v11 }
 0x20d   : > { %v3948_v6 = vmul.u32.u64.low %v1754_v41, %v1749_v16  ;;  %v3949_v24 = vmul.u32.u64.high %v1754_v41, %v1749_v16, %v3948_v6  ;;  %v3952_v32 = vmul.u32.u64.low %v1754_v41, %v1753_v54  ;;  %v3953_v57 = vmul.u32.u64.high %v1754_v41, %v1753_v54, %v3952_v32 }
 0x20e   : > { %v1820_v55 = vadd.s32 1, %v2345_v5  ;;  %vm2013_vm4 = vcmp.eq.s32.totalorder %v3935_v63, 2  ;;  %v2074_v30 = vadd.s32 %v3885_v59, %v3882_v1  ;;  %vm2356_vm5 = vcmp.lt.s32.totalorder %v2355_v38, 0 }
 0x20f   : > { %v2560_v47 = vpop.eup %2559  ;;  %v1817_v61 = vand.u32 8388607, %v1810_v42  ;;  %v2089_v7 = vsel %vm2356_vm5, 0, %v2355_v38  ;;  %v2104_v34 = vsub.s32 4, %v3919_v60  ;;  %v1761_v12 = vmul.u32 %v1754_v41, %v1745_v43 }
 0x210   : > { %v2562_v20 = vpop.eup %2561  ;;  %v2014_v49 = vxor.u32 2147483648, %v2560_v47  ;;  %vm1821_vm6 = vcmp.gt.s32.totalorder %v1820_v55, 0  ;;  %v2090_v22 = vsub.s32 32, %v2089_v7  ;;  %v2094_v33 = vsub.s32 4294967266, %v2089_v7 }
 0x211   : > { %v2011_v15 = vxor.u32 2147483648, %v2562_v20  ;;  %v2091_v56 = vshll.u32 %v3937_v45, %v2089_v7  ;;  %vm1763_vm7 = vc.u32 %v3953_v57, %v3948_v6  ;;  %v1764_v1 = vadd.s32 1, %v3949_v24 }
 0x212   : > { %v2015_v3 = vsel %vm2013_vm4, %v2014_v49, %v2562_v20  ;;  %v2092_v23 = vshrl.u32 %v2074_v30, %v2090_v22  ;;  %v2095_v62 = vadd.s32 127, %v2094_v33  ;;  %v1822_v9 = vsel %vm1821_vm6, %v1820_v55, 0 }
 0x213   : > { %v2012_v59 = vsel %vm2010_vm3, %v2560_v47, %v2011_v15  ;;  %vm2020_vm8 = vcmp.lt.s32.totalorder %v3756_v19, 0  ;;  %v1765_v0 = vsel %vm1763_vm7, %v1764_v1, %v3949_v24  ;;  %v1824_v45 = vand.u32 31, %v1822_v9 }
 0x214   : > { %v2016_v48 = vsel %vm2009_vm0, %v2012_v59, %v2015_v3  ;;  %v2093_v14 = vor.u32 %v2092_v23, %v2091_v56  ;;  %v2096_v29 = vshll.u32 %v2095_v62, 23  ;;  %v1766_v4 = vadd.s32 %v1765_v0, %v1761_v12 }
 0x215   : > { %v2017_v44 = vsel %vm2006_vm2, nan, %v2016_v48  ;;  %v2105_v53 = vsel %vm2020_vm8, %v2104_v34, %v3919_v60  ;;  %v1825_v40 = vsub.s32 32, %v1824_v45  ;;  %v1818_v58 = vor.u32 8388608, %v1817_v61 }
 0x216   : > { %2136 = vst [vmem:[%s3125_s23 + $0x70] sm:$0xff] %v2017_v44  ;;  %v2097_v17 = vor.u32 4788187, %v2096_v29  ;;  %v1767_v63 = vadd.s32 536870912, %v1766_v4  ;;  %v1827_v28 = vshll.u32 %v2672_v21, %v1824_v45  ;;  %v2100_v46 = vcvt.s32.f32 %v2093_v14 }
 0x217   : > { %v1828_v18 = vshrl.u32 %v2673_v25, %v1825_v40  ;;  %v1830_v26 = vshll.u32 %v2673_v25, %v1824_v45  ;;  %v1831_v39 = vshrl.u32 %v2674_v27, %v1825_v40  ;;  %v1834_v52 = vshrl.u32 %v2675_v31, %v1825_v40 }
 0x218   : > { %v2098_v37 = vand.u32 2147483647, %v2097_v17  ;;  %v3981_v41 = vshrl.u32 %v1767_v63, 30  ;;  %v1837_v60 = vshrl.u32 %v2676_v35, %v1825_v40  ;;  %v1823_v2 = vshrl.u32 %v1822_v9, 5 }
 0x219   : > { %v1833_v11 = vshll.u32 %v2674_v27, %v1824_v45  ;;  %v1836_v16 = vshll.u32 %v2675_v31, %v1824_v45  ;;  %v1840_v36 = vshrl.u32 %v2677_v50, %v1825_v40  ;;  %v1829_v25 = vor.u32 %v1828_v18, %v1827_v28 }
 0x21a   : > { %v2101_v5 = vmul.f32 %v2100_v46, %v2098_v37  ;;  %v1769_v38 = vshll.u32 %v3981_v41, 30  ;;  %v1832_v54 = vor.u32 %v1831_v39, %v1830_v26  ;;  %vm3991_vm9 = vcmp.le.f32.partialorder %v2018_v10, 0.7853982 }
 0x21b   : > { %v1838_v43 = vor.u32 %v1837_v60, %v1836_v16  ;;  %v1839_v32 = vshll.u32 %v2676_v35, %v1824_v45  ;;  %v2107_v27 = vsel %vm3991_vm9, 0, %v2105_v53  ;;  %v1835_v50 = vor.u32 %v1834_v52, %v1833_v11 }
 0x21c   : > { %v2102_v55 = vxor.u32 2147483648, %v2101_v5  ;;  %v1770_v31 = vsub.s32 %v1766_v4, %v1769_v38  ;;  %v1826_v47 = vshrl.u32 %v2672_v21, %v1825_v40  ;;  %vm1842_vm10 = vcmp.lt.s32.totalorder %v1823_v2, 1 }
 0x21d   : > { %v1841_v30 = vor.u32 %v1840_v36, %v1839_v32  ;;  %v1858_v61 = vshll.u32 %v1818_v58, 8  ;;  %vm1845_vm11 = vcmp.lt.s32.totalorder %v1823_v2, 4  ;;  %v1850_v49 = vsel %vm1842_vm10, %v1829_v25, %v1832_v54 }
 0x21e   : > { %v2103_v10 = vsel %vm2020_vm8, %v2102_v55, %v2101_v5  ;;  %v1772_v20 = vsub.s32 0, %v1770_v31  ;;  %vm1843_vm12 = vcmp.lt.s32.totalorder %v1823_v2, 2  ;;  %vm1844_vm13 = vcmp.lt.s32.totalorder %v1823_v2, 3 }
 0x21f   : > { %v2106_v35 = vsel %vm3991_vm9, %v3756_v19, %v2103_v10  ;;  %v1851_v7 = vsel %vm1845_vm11, %v1838_v43, 920167782  ;;  %v1847_v21 = vsel %vm1845_vm11, %v1835_v50, 2102212464  ;;  %v1854_v33 = vsel %vm1842_vm10, %v1832_v54, %v1835_v50 }
 0x220   : > { %2563 = vcosq.f32 %v2106_v35  ;;  %v2342_v34 = vmin.u32 %v1772_v20, %v1770_v31  ;;  %v1852_v15 = vsel %vm1844_vm13, %v1835_v50, %v1851_v7  ;;  %v1855_v12 = vsel %vm1845_vm11, %v1841_v30, 1326507024 }
 0x221   : > { %2565 = vsinq.f32 %v2106_v35  ;;  %v1853_v22 = vsel %vm1843_vm12, %v1850_v49, %v1852_v15  ;;  %v1846_v56 = vsel %vm1842_vm10, %v1826_v47, %v1829_v25  ;;  %v1848_v1 = vsel %vm1844_vm13, %v1832_v54, %v1847_v21 }
 0x222   : > { %v1774_v3 = vclz %v2342_v34  ;;  %v1856_v59 = vsel %vm1844_vm13, %v1838_v43, %v1855_v12  ;;  %v4008_v23 = vmul.u32.u64.low %v1858_v61, %v1853_v22  ;;  %v4009_v62 = vmul.u32.u64.high %v1858_v61, %v1853_v22, %v4008_v23 }
 0x223   : > { %v2111_v9 = vadd.s32 3, %v2107_v27  ;;  %v1857_v0 = vsel %vm1843_vm12, %v1854_v33, %v1856_v59  ;;  %v1849_v14 = vsel %vm1843_vm12, %v1846_v56, %v1848_v1  ;;  %v1762_v40 = vadd.s32 %v3948_v6, %v3953_v57 }
 0x224   : > { %v2343_v48 = vadd.s32 4294967294, %v1774_v3  ;;  %v4012_v45 = vmul.u32.u64.low %v1858_v61, %v1857_v0  ;;  %v4013_v44 = vmul.u32.u64.high %v1858_v61, %v1857_v0, %v4012_v45  ;;  %v1868_v4 = vadd.s32 1, %v4009_v62 }
 0x225   : > { %v2112_v53 = vand.u32 3, %v2111_v9  ;;  %v1865_v58 = vmul.u32 %v1858_v61, %v1849_v14  ;;  %vm2110_vm3 = vweird.f32 %v3756_v19  ;;  %v1792_v27 = vsub.s32 4, %v3981_v41 }
 0x226   : > { %vm2344_vm14 = vcmp.lt.s32.totalorder %v2343_v48, 0  ;;  %vm1867_vm15 = vc.u32 %v4013_v44, %v4008_v23  ;;  %vm1708_vm4 = vcmp.lt.s32.totalorder %v3834_v8, 0  ;;  %vm1707_vm5 = vcmp.le.f32.partialorder %v1706_v51, 0.7853982 }
 0x227   : > { %v1777_v29 = vsel %vm2344_vm14, 0, %v2343_v48  ;;  %v1869_v39 = vsel %vm1867_vm15, %v1868_v4, %v4009_v62  ;;  %vm2117_vm0 = vcmp.eq.s32.totalorder %v2112_v53, 2  ;;  %vm2114_vm1 = vcmp.eq.s32.totalorder %v2112_v53, 0 }
 0x228   : > { %v1778_v17 = vsub.s32 32, %v1777_v29  ;;  %v1782_v63 = vsub.s32 4294967266, %v1777_v29  ;;  %v1779_v46 = vshll.u32 %v1770_v31, %v1777_v29  ;;  %v1870_v60 = vadd.s32 %v1869_v39, %v1865_v58 }
 0x229   : > { %vm2113_vm2 = vcmp.lt.s32.totalorder %v2112_v53, 2  ;;  %v1793_v19 = vsel %vm1708_vm4, %v1792_v27, %v3981_v41  ;;  %v1866_v21 = vadd.s32 %v4008_v23, %v4013_v44  ;;  %vm1798_vm10 = vweird.f32 %v3834_v8 }
 0x22a   : > { %v2564_v28 = vpop.eup %2563  ;;  %v1780_v18 = vshrl.u32 %v1762_v40, %v1778_v17  ;;  %v1783_v26 = vadd.s32 127, %v1782_v63  ;;  %v1871_v57 = vadd.s32 536870912, %v1870_v60  ;;  %v1795_v20 = vsel %vm1707_vm5, 0, %v1793_v19 }
 0x22b   : > { %v2566_v37 = vpop.eup %2565  ;;  %v2118_v52 = vxor.u32 2147483648, %v2564_v28  ;;  %v1799_v7 = vadd.s32 3, %v1795_v20  ;;  %vm1812_vm11 = vcmp.lt.s32.totalorder %v3895_v13, 0  ;;  %vm1811_vm12 = vcmp.le.f32.partialorder %v1810_v42, 0.7853982 }
 0x22c   : > { %v2115_v2 = vxor.u32 2147483648, %v2566_v37  ;;  %v1781_v11 = vor.u32 %v1780_v18, %v1779_v46  ;;  %v1784_v16 = vshll.u32 %v1783_v26, 23  ;;  %v1872_v25 = vshrl.u32 %v1871_v57, 30 }
 0x22d   : > { %v2119_v6 = vsel %vm2117_vm0, %v2118_v52, %v2566_v37  ;;  %v1800_v33 = vand.u32 3, %v1799_v7  ;;  %vm1902_vm0 = vweird.f32 %v3895_v13 }
 0x22e   : > { %v2116_v36 = vsel %vm2114_vm1, %v2564_v28, %v2115_v2  ;;  %v1785_v5 = vor.u32 4788187, %v1784_v16  ;;  %v1788_v43 = vcvt.s32.f32 %v1781_v11  ;;  %v1873_v32 = vshll.u32 %v1872_v25, 30 }
 0x22f   : > { %v2120_v38 = vsel %vm2113_vm2, %v2116_v36, %v2119_v6  ;;  %vm1805_vm7 = vcmp.eq.s32.totalorder %v1800_v33, 2  ;;  %vm1802_vm8 = vcmp.eq.s32.totalorder %v1800_v33, 0  ;;  %vm1801_vm9 = vcmp.lt.s32.totalorder %v1800_v33, 2 }
 0x230   : > { %v2121_v54 = vsel %vm2110_vm3, nan, %v2120_v38  ;;  %v1786_v24 = vand.u32 2147483647, %v1785_v5  ;;  %v1874_v31 = vsub.s32 %v1870_v60, %v1873_v32  ;;  %v1896_v53 = vsub.s32 4, %v1872_v25 }
 0x231   : > { %2137 = vst [vmem:[%s3125_s23 + $0x78] sm:$0xff] %v2121_v54 }
 0x232   : > { %v1789_v55 = vmul.f32 %v1788_v43, %v1786_v24  ;;  %v1876_v47 = vsub.s32 0, %v1874_v31  ;;  %v1897_v63 = vsel %vm1812_vm11, %v1896_v53, %v1872_v25 }
 0x233   : > { %v1899_v58 = vsel %vm1811_vm12, 0, %v1897_v63 }
 0x234   : > { %v1790_v50 = vxor.u32 2147483648, %v1789_v55  ;;  %v2346_v10 = vmin.u32 %v1876_v47, %v1874_v31  ;;  %v1903_v28 = vadd.s32 3, %v1899_v58 }
 0x236   : > { %v1791_v30 = vsel %vm1708_vm4, %v1790_v50, %v1789_v55  ;;  %v1878_v49 = vclz %v2346_v10  ;;  %v1904_v46 = vand.u32 3, %v1903_v28 }
 0x237   : > { %v1794_v61 = vsel %vm1707_vm5, %v3834_v8, %v1791_v30 }
 0x238   : > { %2567 = vcosq.f32 %v1794_v61  ;;  %v2347_v35 = vadd.s32 4294967294, %v1878_v49  ;;  %vm1909_vm13 = vcmp.eq.s32.totalorder %v1904_v46, 2  ;;  %vm1906_vm14 = vcmp.eq.s32.totalorder %v1904_v46, 0 }
 0x239   : > { %2569 = vsinq.f32 %v1794_v61  ;;  %vm1905_vm15 = vcmp.lt.s32.totalorder %v1904_v46, 2 }
 0x23a   : > { %vm2348_vm6 = vcmp.lt.s32.totalorder %v2347_v35, 0 }
 0x23b   : > { %v1881_v34 = vsel %vm2348_vm6, 0, %v2347_v35 }
 0x23c   : > { %v1882_v15 = vsub.s32 32, %v1881_v34  ;;  %v1886_v22 = vsub.s32 4294967266, %v1881_v34  ;;  %v1883_v51 = vshll.u32 %v1874_v31, %v1881_v34 }
 0x23e   : > { %v1884_v12 = vshrl.u32 %v1866_v21, %v1882_v15  ;;  %v1887_v3 = vadd.s32 127, %v1886_v22 }
 0x240   : > { %v1885_v59 = vor.u32 %v1884_v12, %v1883_v51  ;;  %v1888_v62 = vshll.u32 %v1887_v3, 23 }
 0x242   : > { %v2568_v41 = vpop.eup %2567  ;;  %v1889_v0 = vor.u32 4788187, %v1888_v62  ;;  %v1892_v14 = vcvt.s32.f32 %v1885_v59 }
 0x243   : > { %v2570_v56 = vpop.eup %2569  ;;  %v1806_v1 = vxor.u32 2147483648, %v2568_v41 }
 0x244   : > { %v1803_v9 = vxor.u32 2147483648, %v2570_v56  ;;  %v1890_v44 = vand.u32 2147483647, %v1889_v0 }
 0x245   : > { %v1807_v48 = vsel %vm1805_vm7, %v1806_v1, %v2570_v56 }
 0x246   : > { %v1804_v45 = vsel %vm1802_vm8, %v2568_v41, %v1803_v9  ;;  %v1893_v4 = vmul.f32 %v1892_v14, %v1890_v44 }
 0x247   : > { %v1808_v23 = vsel %vm1801_vm9, %v1804_v45, %v1807_v48 }
 0x248   : > { %v1809_v29 = vsel %vm1798_vm10, nan, %v1808_v23  ;;  %v1894_v40 = vxor.u32 2147483648, %v1893_v4 }
 0x249   : > { %2134 = vst [vmem:[%s3125_s23 + $0x60] sm:$0xff] %v1809_v29 }
 0x24a   : > { %v1895_v17 = vsel %vm1812_vm11, %v1894_v40, %v1893_v4 }
 0x24b   : > { %v1898_v8 = vsel %vm1811_vm12, %v3895_v13, %v1895_v17 }
 0x24c   : > { %2571 = vcosq.f32 %v1898_v8 }
 0x24d   : > { %2573 = vsinq.f32 %v1898_v8 }
 0x256   : > { %v2572_v18 = vpop.eup %2571 }
 0x257   : > { %v2574_v26 = vpop.eup %2573  ;;  %v1910_v39 = vxor.u32 2147483648, %v2572_v18 }
 0x258   : > { %v1907_v42 = vxor.u32 2147483648, %v2574_v26 }
 0x259   : > { %v1911_v37 = vsel %vm1909_vm13, %v1910_v39, %v2574_v26 }
 0x25a   : > { %v1908_v52 = vsel %vm1906_vm14, %v2572_v18, %v1907_v42 }
 0x25b   : > { %v1912_v60 = vsel %vm1905_vm15, %v1908_v52, %v1911_v37 }
 0x25c   : > { %v1913_v2 = vsel %vm1902_vm0, nan, %v1912_v60 }
 0x25d   : > { %2135 = vst [vmem:[%s3125_s23 + $0x68] sm:$0xff] %v1913_v2 }
 0x25e   : > { %2588 = shalt.err (!%p2585_p9)
}
 0x25f   : > { %s2589_s13 = scalar_lea.hbm %s4042_s18, 2048  ;;  %s2593_s27 = scalar_lea.hbm %s4106_s4, 8192 }
 0x260   : > { %p2590_p10 = scmp.ne.s32.totalorder %s4042_s18, %s2589_s13  ;;  %p2594_p13 = scmp.lt.u32.totalorder %s4042_s18, %s4106_s4 }
 0x261   : > { %p2595_p0 = scmp.lt.u32.totalorder %s2593_s27, %s2589_s13  ;;  %p2597_p2 = scmp.lt.u32.totalorder %s2589_s13, %s4042_s18 }
 0x262   : > { %p2591_p11 = pnand %p2590_p10, %p2757_p3 }
 0x263   : > { %p2596_p1 = por %p2595_p0, %p2594_p13 }
 0x264   : > { %p2592_p12 = pneg %p2591_p11 }
 0x265   : > { %p2598_p4 = por %p2597_p2, %p2596_p1 }
 0x267   : > { %p2599_p5 = pnand %p2598_p4, %p2592_p12 }
 0x269   : > { %2602 = shalt.err (!%p2599_p5)
}
 0x26a   : > { %s2679_s8 = smov 256   ;;  %s2680_s9 = smov 16  }
 0x26b   : > { %2429 = dma.vmem_to_hbm [thread:$0]  (%p2757_p3), %s4044_s6, 2048, %s4042_s18, %s4050_s19, %s2679_s8, %s2679_s8, %s2680_s9  }
 0x26c PF: > { %p2435_p6 = scmp.ge.s32.totalorder %s2669_s22, 2  ;;  %s2172_s10 = sand.u32 1, %s2641_s15  }
 0x26d   : > { %s2173_s11 = scalar_lea.sflag [#allocation3], %s2172_s10 }
 0x26e   : > { %p2432_p7 = pnand %p2435_p6, %p2766_p8 }
 0x270   : > { %2636 = dma.done.wait (!%p2432_p7), %s2173_s11, 2048  }
 0x271   : > { %2638 = vsyncadd (!%p2432_p7), %s2173_s11, 4294965248  ;;  %s17_s22 = sadd.s32 1, %s2669_s22   ;;  %s4137_s15 = smov %s2645_s16 }
 0x272   : > { %p14_p9 = scmp.ge.s32.totalorder %s17_s22, 6   ;;  %s4138_s16 = smov %s2649_s17 }
 0x273   : > { %s4139_s17 = smov %s2775_s7  ;;  %s4140_s18 = smov %s2661_s20 }
 0x274   : > { %s4141_s19 = smov %s2665_s21  ;;  %s4142_s20 = smov %s4145_s25 }
 0x275   : > { %s4143_s21 = smov %s4149_s26  ;;  %16 = sbr.rel (!%p14_p9) target bundleno = 5 (0x5), region = 80 }
 0x27c   :  { %2178 = vsyncpa [#allocation3], 1 }
 0x27d   :  { %2180 = vsyncpa [#allocation3 + $0x1], 1 }

</bundles_post_ra>
